<compile_context>
chip_gen: v7x
topology: tpu7x:2x2x1
jax: 0.10.0
libtpu: 0.0.40
codegen_flags: <defaults>
</compile_context>

<pallas_src>
import functools
import math

import jax
import jax.numpy as jnp
from jax.experimental import pallas as pl
from jax.experimental.pallas import tpu as pltpu

LANE = 128
_LAYERS = ("enc_gc1", "enc_gc2", "dec_gc1", "dec_gc2")


def _tpu_vmem_capacity_bytes():
    try:
        return int(pltpu.get_tpu_info().vmem_capacity_bytes)
    except Exception:
        return 128 * 1024 * 1024


_VMEM_CAP = _tpu_vmem_capacity_bytes()
_SMALL_VMEM = _VMEM_CAP <= 64 * 1024 * 1024          # v7x-class (64 MiB / TC)
VMEM_LIMIT = (40 if _SMALL_VMEM else 64) * 1024 * 1024        # tiled kernels
TILE_BUDGET = (28 if _SMALL_VMEM else 44) * 1024 * 1024       # per-call work set
FUSED_BUDGET = (40 if _SMALL_VMEM else 80) * 1024 * 1024      # whole-model path
FUSED_VMEM_LIMIT = FUSED_BUDGET + 8 * 1024 * 1024


def _ceil_to(n, m):
    return ((n + m - 1) // m) * m


def _pad2(a, rows, cols):
    out = jnp.zeros((rows, cols), a.dtype)
    return out.at[: a.shape[0], : a.shape[1]].set(a)


def _row_tile(n_pad):
    """Largest row tile from {1024,512,256,128} dividing n_pad; prefer >=2 row
    tiles so the 'parallel' grid axis can shard across v7x's 2 TensorCores."""
    cands = [t for t in (1024, 512, 256, 128) if n_pad % t == 0]
    if not cands:
        return n_pad
    multi = [t for t in cands if n_pad // t >= 2]
    return (multi or cands)[0]


def _resident_row_tile(n_pad, fout_pad, fnext_pad, emit_act, has_next):
    """Pick tm for the resident-support spmm kernel, or None if it can't fit."""
    fixed = n_pad * fout_pad * 2 + fout_pad * 4           # support + bias
    if has_next:
        fixed += fout_pad * fnext_pad * 2                  # next-layer weight
    cands = [t for t in (1024, 512, 256, 128) if n_pad % t == 0] or [n_pad]
    ordered = ([t for t in cands if n_pad // t >= 2]
               + [t for t in cands if n_pad // t < 2])
    for tm in ordered:
        per = 2 * tm * n_pad * 2                           # adj strip, x2 buf
        if emit_act:
            per += 2 * tm * fout_pad * 4
        if has_next:
            per += 2 * tm * fnext_pad * 2
        if fixed + per <= TILE_BUDGET:
            return tm
    return None


def _ktiled_tiles(n_pad):
    tm = _row_tile(n_pad)
    tk = next((t for t in (512, 256, 128) if n_pad % t == 0), n_pad)
    return tm, tk


# ---------------------------------------------------------------------------
# Kernel 1: support = x @ W   (only needed standalone for the first layer /
# the k-tiled fallback; x is cast to bf16 inside the kernel)
# ---------------------------------------------------------------------------
def _support_kernel(x_ref, w_ref, o_ref):
    o_ref[...] = jnp.dot(
        x_ref[...].astype(jnp.bfloat16), w_ref[...],
        preferred_element_type=jnp.float32,
    ).astype(o_ref.dtype)


def gcn_support(x_pad, w_bf16, tm):
    n_pad, fin_pad = x_pad.shape
    fout_pad = w_bf16.shape[1]
    return pl.pallas_call(
        _support_kernel,
        out_shape=jax.ShapeDtypeStruct((n_pad, fout_pad), jnp.bfloat16),
        grid_spec=pltpu.PrefetchScalarGridSpec(
            num_scalar_prefetch=0,
            grid=(n_pad // tm,),
            in_specs=[
                pl.BlockSpec((tm, fin_pad), lambda i: (i, 0)),
                pl.BlockSpec((fin_pad, fout_pad), lambda i: (0, 0)),
            ],
            out_specs=pl.BlockSpec((tm, fout_pad), lambda i: (i, 0)),
        ),
        compiler_params=pltpu.CompilerParams(
            dimension_semantics=("parallel",),
            vmem_limit_bytes=VMEM_LIMIT,
        ),
    )(x_pad, w_bf16)


# ---------------------------------------------------------------------------
# Kernel 2a: resident-support spmm with fused next-layer support.
#   h = relu(adj_strip @ support + b)
#   optionally emit h (f32, for the returned tensors)
#   optionally emit h.bf16 @ W_next (bf16) -> next layer's support
# ---------------------------------------------------------------------------
def _make_resident_spmm_kernel(emit_act, has_next):
    def kernel(*refs):
        adj_ref, s_ref, b_ref = refs[0], refs[1], refs[2]
        wn_ref = refs[3] if has_next else None
        out_refs = refs[4:] if has_next else refs[3:]

        h = jnp.dot(adj_ref[...], s_ref[...],
                    preferred_element_type=jnp.float32)
        h = jnp.maximum(h + b_ref[...], 0.0)

        o = 0
        if emit_act:
            out_refs[o][...] = h.astype(out_refs[o].dtype)
            o += 1
        if has_next:
            sn = jnp.dot(h.astype(jnp.bfloat16), wn_ref[...],
                         preferred_element_type=jnp.float32)
            out_refs[o][...] = sn.astype(out_refs[o].dtype)

    return kernel


def gcn_spmm_resident(adj_bf16, support_bf16, b_pad, w_next_bf16, act_dtype, tm):
    n_pad, fout_pad = support_bf16.shape
    emit_act = act_dtype is not None
    has_next = w_next_bf16 is not None
    assert emit_act or has_next

    in_arrays = [adj_bf16, support_bf16, b_pad]
    in_specs = [
        pl.BlockSpec((tm, n_pad), lambda i: (i, 0)),          # adj row strip
        pl.BlockSpec((n_pad, fout_pad), lambda i: (0, 0)),    # support: resident
        pl.BlockSpec((1, fout_pad), lambda i: (0, 0)),        # bias: resident
    ]
    out_shapes, out_specs = [], []
    if has_next:
        fnext_pad = w_next_bf16.shape[1]
        in_arrays.append(w_next_bf16)
        in_specs.append(pl.BlockSpec((fout_pad, fnext_pad), lambda i: (0, 0)))
    if emit_act:
        out_shapes.append(jax.ShapeDtypeStruct((n_pad, fout_pad), act_dtype))
        out_specs.append(pl.BlockSpec((tm, fout_pad), lambda i: (i, 0)))
    if has_next:
        out_shapes.append(jax.ShapeDtypeStruct((n_pad, fnext_pad), jnp.bfloat16))
        out_specs.append(pl.BlockSpec((tm, fnext_pad), lambda i: (i, 0)))

    return pl.pallas_call(
        _make_resident_spmm_kernel(emit_act, has_next),
        out_shape=tuple(out_shapes),
        grid_spec=pltpu.PrefetchScalarGridSpec(
            num_scalar_prefetch=0,
            grid=(n_pad // tm,),
            in_specs=in_specs,
            out_specs=tuple(out_specs),
        ),
        compiler_params=pltpu.CompilerParams(
            dimension_semantics=("parallel",),
            vmem_limit_bytes=VMEM_LIMIT,
        ),
    )(*in_arrays)


# ---------------------------------------------------------------------------
# Kernel 2b: k-tiled fallback for very large graphs (row, contraction) grid,
# f32 VMEM accumulator, bias+relu at finalize, configurable output dtype.
# ---------------------------------------------------------------------------
def _spmm_ktiled_kernel(adj_ref, s_ref, b_ref, o_ref, acc_ref):
    k = pl.program_id(1)

    @pl.when(k == 0)
    def _():
        acc_ref[...] = jnp.zeros_like(acc_ref)

    acc_ref[...] += jnp.dot(adj_ref[...], s_ref[...],
                            preferred_element_type=jnp.float32)

    @pl.when(k == pl.num_programs(1) - 1)
    def _():
        o_ref[...] = jnp.maximum(acc_ref[...] + b_ref[...], 0.0).astype(o_ref.dtype)


def gcn_spmm_ktiled(adj_bf16, support_bf16, b_pad, tm, tk, out_dtype):
    n_pad = adj_bf16.shape[0]
    fout_pad = support_bf16.shape[1]
    return pl.pallas_call(
        _spmm_ktiled_kernel,
        out_shape=jax.ShapeDtypeStruct((n_pad, fout_pad), out_dtype),
        grid_spec=pltpu.PrefetchScalarGridSpec(
            num_scalar_prefetch=0,
            grid=(n_pad // tm, n_pad // tk),           # contraction axis last
            in_specs=[
                pl.BlockSpec((tm, tk), lambda i, k: (i, k)),
                pl.BlockSpec((tk, fout_pad), lambda i, k: (k, 0)),
                pl.BlockSpec((1, fout_pad), lambda i, k: (0, 0)),
            ],
            out_specs=pl.BlockSpec((tm, fout_pad), lambda i, k: (i, 0)),
            scratch_shapes=[pltpu.VMEM((tm, fout_pad), jnp.float32)],
        ),
        compiler_params=pltpu.CompilerParams(
            dimension_semantics=("parallel", "arbitrary"),
            vmem_limit_bytes=VMEM_LIMIT,
        ),
    )(adj_bf16, support_bf16, b_pad)


# ---------------------------------------------------------------------------
# Fused whole-model path: all 4 layers in ONE pallas_call, VMEM-resident
# ---------------------------------------------------------------------------
def _fused_student_kernel(x_ref, adj_ref,
                          w1_ref, b1_ref, w2_ref, b2_ref,
                          w3_ref, b3_ref, w4_ref, b4_ref,
                          emb_ref, srm_ref):
    adj = adj_ref[...]                       # bf16, reused by all 4 layers

    def layer(h, w_ref, b_ref):
        s = jnp.dot(h.astype(jnp.bfloat16), w_ref[...],
                    preferred_element_type=jnp.float32)
        o = jnp.dot(adj, s.astype(jnp.bfloat16),
                    preferred_element_type=jnp.float32)
        return jnp.maximum(o + b_ref[...], 0.0)

    h1 = layer(x_ref[...], w1_ref, b1_ref)
    h2 = layer(h1, w2_ref, b2_ref)           # embedding
    emb_ref[...] = h2.astype(emb_ref.dtype)
    h3 = layer(h2, w3_ref, b3_ref)
    h4 = layer(h3, w4_ref, b4_ref)           # super-resolved matrix
    srm_ref[...] = h4.astype(srm_ref.dtype)


def student_forward_fused(params, x, adj):
    n, f_in = x.shape
    n_pad = _ceil_to(n, LANE)                # 128-aligned node dim (lane-dense)
    fin_pad = _ceil_to(f_in, LANE)
    x_p = _pad2(x, n_pad, fin_pad).astype(jnp.bfloat16)
    adj_p = _pad2(adj, n_pad, n_pad).astype(jnp.bfloat16)

    args = [x_p, adj_p]
    fouts, fpads = [], []
    for name in _LAYERS:
        w, b = params[name]
        fi, fo = w.shape
        fi_p, fo_p = _ceil_to(fi, LANE), _ceil_to(fo, LANE)
        args.append(_pad2(w, fi_p, fo_p).astype(jnp.bfloat16))
        args.append(_pad2(b.reshape(1, -1), 1, fo_p).astype(jnp.float32))
        fouts.append(fo)
        fpads.append(fo_p)

    emb_p, srm_p = pl.pallas_call(
        _fused_student_kernel,
        out_shape=(jax.ShapeDtypeStruct((n_pad, fpads[1]), jnp.float32),
                   jax.ShapeDtypeStruct((n_pad, fpads[3]), jnp.float32)),
        in_specs=[pl.BlockSpec(memory_space=pltpu.VMEM)] * len(args),
        out_specs=(pl.BlockSpec(memory_space=pltpu.VMEM),
                   pl.BlockSpec(memory_space=pltpu.VMEM)),
        compiler_params=pltpu.CompilerParams(vmem_limit_bytes=FUSED_VMEM_LIMIT),
    )(*args)
    return emb_p[:n, :fouts[1]], srm_p[:n, :fouts[3]]


# ---------------------------------------------------------------------------
# Tiled path (scales in N); resident-support + fused next-support by default,
# k-tiled accumulate fallback for graphs too large for a resident support.
# ---------------------------------------------------------------------------
def student_forward_tiled(params, x, adj, force_ktiled=False):
    n, f_in = x.shape
    n_pad = _ceil_to(n, LANE)
    fin_pad = _ceil_to(f_in, LANE)

    adj_bf16 = _pad2(adj, n_pad, n_pad).astype(jnp.bfloat16)
    x_pad = _pad2(x, n_pad, fin_pad)          # f32; cast to bf16 inside kernel

    ws, bs, fouts, fpads = [], [], [], []
    for name in _LAYERS:
        w, b = params[name]
        fi, fo = w.shape
        fi_p, fo_p = _ceil_to(fi, LANE), _ceil_to(fo, LANE)
        ws.append(_pad2(w, fi_p, fo_p).astype(jnp.bfloat16))
        bs.append(_pad2(b.reshape(1, -1), 1, fo_p).astype(jnp.float32))
        fouts.append(fo)
        fpads.append(fo_p)

    # layer-1 support is the only standalone x @ W pass
    support = gcn_support(x_pad, ws[0], _row_tile(n_pad))

    emb_pad = srm_pad = None
    for li in range(4):
        fo_p = fpads[li]
        has_next = li < 3
        emit_act = li in (1, 3)               # embedding / final output only
        fn_p = fpads[li + 1] if has_next else 0
        w_next = ws[li + 1] if has_next else None

        tm = None
        if not force_ktiled:
            tm = _resident_row_tile(n_pad, fo_p, fn_p, emit_act, has_next)

        act = None
        if tm is not None:
            outs = gcn_spmm_resident(
                adj_bf16, support, bs[li], w_next,
                jnp.float32 if emit_act else None, tm)
            o = 0
            if emit_act:
                act = outs[o]
                o += 1
            if has_next:
                support = outs[o]
        else:
            tm2, tk2 = _ktiled_tiles(n_pad)
            out_dtype = jnp.float32 if emit_act else jnp.bfloat16
            act = gcn_spmm_ktiled(adj_bf16, support, bs[li], tm2, tk2, out_dtype)
            if has_next:
                support = gcn_support(act, ws[li + 1], _row_tile(n_pad))

        if li == 1:
            emb_pad = act
        elif li == 3:
            srm_pad = act

    return emb_pad[:n, :fouts[1]], srm_pad[:n, :fouts[3]]


def _fused_footprint_bytes(n, f_in, params):
    n_pad = _ceil_to(n, LANE)
    fin_pad = _ceil_to(f_in, LANE)
    fpads = [_ceil_to(params[k][0].shape[1], LANE) for k in _LAYERS]
    total = n_pad * n_pad * 2 + n_pad * fin_pad * 2        # adj + x (bf16)
    prev = fin_pad
    for fp in fpads:
        total += prev * fp * 2 + fp * 4                     # weight + bias
        prev = fp
    maxf = max([fin_pad] + fpads)
    total += 3 * n_pad * maxf * 4                           # live f32 activations
    total += n_pad * (fpads[1] + fpads[3]) * 4              # f32 outputs
    return total


def student_forward(params, x, adj):
    n, f_in = x.shape
    if _fused_footprint_bytes(n, f_in, params) <= FUSED_BUDGET:
        return student_forward_fused(params, x, adj)
    return student_forward_tiled(params, x, adj)


# ---------------------------------------------------------------------------
# Parameter init (matches GCN.reset_parameters)
# ---------------------------------------------------------------------------
def init_gcn_params(key, in_features, out_features):
    stdv = 1.0 / math.sqrt(out_features)
    kw, kb = jax.random.split(key)
    w = jax.random.uniform(kw, (in_features, out_features), jnp.float32,
                           minval=-stdv, maxval=stdv)
    b = jax.random.uniform(kb, (out_features,), jnp.float32,
                           minval=-stdv, maxval=stdv)
    return w, b


def init_student_params(key, nfeat, nhid1, nhid2, nhid3, nhid4):
    keys = jax.random.split(key, 4)
    return {
        "enc_gc1": init_gcn_params(keys[0], nfeat, nhid1),
        "enc_gc2": init_gcn_params(keys[1], nhid1, nhid2),
        "dec_gc1": init_gcn_params(keys[2], nhid2, nhid3),
        "dec_gc2": init_gcn_params(keys[3], nhid3, nhid4),
    }


if __name__ == "__main__":
    N = 8
    nfeat, nhid1, nhid2, nhid3, nhid4 = 32, 16, 8, 16, 32
    dropout = 0.5  # eval semantics -> identity

    key = jax.random.PRNGKey(0)
    k_params, k_x, k_adj = jax.random.split(key, 3)
    params = init_student_params(k_params, nfeat, nhid1, nhid2, nhid3, nhid4)

    x = jax.random.normal(k_x, (N, nfeat), jnp.float32)
    a = jax.random.uniform(k_adj, (N, N), jnp.float32)
    a = (a + a.T) * 0.5 + jnp.eye(N, dtype=jnp.float32)
    adj = a / jnp.sum(a, axis=1, keepdims=True)

    # Auto-dispatched path (fused whole-model kernel for these shapes)
    emb_f, srm_f = jax.jit(student_forward)(params, x, adj)
    # Tiled path: resident-support kernels with fused next-layer support
    emb_t, srm_t = jax.jit(student_forward_tiled)(params, x, adj)
    # Tiled path: k-tiled accumulator fallback, forced to exercise it
    fwd_k = jax.jit(functools.partial(student_forward_tiled, force_ktiled=True))
    emb_k, srm_k = fwd_k(params, x, adj)
    jax.block_until_ready((emb_f, srm_f, emb_t, srm_t, emb_k, srm_k))

    # Reference matching kernel numerics (bf16 MXU inputs, f32 accumulation)
    def ref_layer(h, w, b, adj_):
        s = jnp.dot(h.astype(jnp.bfloat16), w.astype(jnp.bfloat16),
                    preferred_element_type=jnp.float32)
        o = jnp.dot(adj_.astype(jnp.bfloat16), s.astype(jnp.bfloat16),
                    preferred_element_type=jnp.float32)
        return jnp.maximum(o + b, 0.0)

    h = ref_layer(x, *params["enc_gc1"], adj)
    emb_ref = ref_layer(h, *params["enc_gc2"], adj)
    h = ref_layer(emb_ref, *params["dec_gc1"], adj)
    srm_ref = ref_layer(h, *params["dec_gc2"], adj)

    for got, want in ((emb_f, emb_ref), (srm_f, srm_ref),
                      (emb_t, emb_ref), (srm_t, srm_ref),
                      (emb_k, emb_ref), (srm_k, srm_ref)):
        err = float(jnp.max(jnp.abs(got - want)))
        assert jnp.allclose(got, want, atol=2e-2, rtol=2e-2), err

    print("KERNEL_OK")
</pallas_src>

<mosaic_0001>
module attributes {stable_mosaic.version = 11 : i64} {
  func.func @_fused_student_kernel(%arg0: memref<128x128xbf16, #tpu.memory_space<vmem>>, %arg1: memref<128x128xbf16, #tpu.memory_space<vmem>>, %arg2: memref<128x128xbf16, #tpu.memory_space<vmem>>, %arg3: memref<1x128xf32, #tpu.memory_space<vmem>>, %arg4: memref<128x128xbf16, #tpu.memory_space<vmem>>, %arg5: memref<1x128xf32, #tpu.memory_space<vmem>>, %arg6: memref<128x128xbf16, #tpu.memory_space<vmem>>, %arg7: memref<1x128xf32, #tpu.memory_space<vmem>>, %arg8: memref<128x128xbf16, #tpu.memory_space<vmem>>, %arg9: memref<1x128xf32, #tpu.memory_space<vmem>>, %arg10: memref<128x128xf32, #tpu.memory_space<vmem>>, %arg11: memref<128x128xf32, #tpu.memory_space<vmem>>) attributes {dimension_semantics = [], scalar_prefetch = 0 : i64, scratch_operands = 0 : i64, tpu.core_type = #tpu.core_type<tc>} {
    %c0 = arith.constant 0 : index
    %c0_0 = arith.constant 0 : index
    %0 = vector.load %arg1[%c0, %c0_0] : memref<128x128xbf16, #tpu.memory_space<vmem>>, vector<128x128xbf16>
    %c0_1 = arith.constant 0 : index
    %c0_2 = arith.constant 0 : index
    %1 = vector.load %arg0[%c0_1, %c0_2] : memref<128x128xbf16, #tpu.memory_space<vmem>>, vector<128x128xbf16>
    %c0_3 = arith.constant 0 : index
    %c0_4 = arith.constant 0 : index
    %2 = vector.load %arg2[%c0_3, %c0_4] : memref<128x128xbf16, #tpu.memory_space<vmem>>, vector<128x128xbf16>
    %cst = arith.constant dense<0.000000e+00> : vector<128x128xf32>
    %3 = tpu.matmul %1, %2, %cst {dimension_numbers = #tpu.dot_dimension_numbers<[1], [0], [0], [1], [0, 0, 1, 1], [], []>} : vector<128x128xbf16>, vector<128x128xbf16>, vector<128x128xf32> -> vector<128x128xf32>
    %4 = arith.truncf %3 : vector<128x128xf32> to vector<128x128xbf16>
    %cst_5 = arith.constant dense<0.000000e+00> : vector<128x128xf32>
    %5 = tpu.matmul %0, %4, %cst_5 {dimension_numbers = #tpu.dot_dimension_numbers<[1], [0], [0], [1], [0, 0, 1, 1], [], []>} : vector<128x128xbf16>, vector<128x128xbf16>, vector<128x128xf32> -> vector<128x128xf32>
    %c0_6 = arith.constant 0 : index
    %c0_7 = arith.constant 0 : index
    %6 = vector.load %arg3[%c0_6, %c0_7] : memref<1x128xf32, #tpu.memory_space<vmem>>, vector<1x128xf32>
    %7 = vector.broadcast %6 : vector<1x128xf32> to vector<128x128xf32>
    %8 = arith.addf %5, %7 : vector<128x128xf32>
    %cst_8 = arith.constant 0.000000e+00 : f32
    %9 = vector.broadcast %cst_8 : f32 to vector<128x128xf32>
    %10 = arith.maximumf %8, %9 : vector<128x128xf32>
    %11 = arith.truncf %10 : vector<128x128xf32> to vector<128x128xbf16>
    %c0_9 = arith.constant 0 : index
    %c0_10 = arith.constant 0 : index
    %12 = vector.load %arg4[%c0_9, %c0_10] : memref<128x128xbf16, #tpu.memory_space<vmem>>, vector<128x128xbf16>
    %cst_11 = arith.constant dense<0.000000e+00> : vector<128x128xf32>
    %13 = tpu.matmul %11, %12, %cst_11 {dimension_numbers = #tpu.dot_dimension_numbers<[1], [0], [0], [1], [0, 0, 1, 1], [], []>} : vector<128x128xbf16>, vector<128x128xbf16>, vector<128x128xf32> -> vector<128x128xf32>
    %14 = arith.truncf %13 : vector<128x128xf32> to vector<128x128xbf16>
    %cst_12 = arith.constant dense<0.000000e+00> : vector<128x128xf32>
    %15 = tpu.matmul %0, %14, %cst_12 {dimension_numbers = #tpu.dot_dimension_numbers<[1], [0], [0], [1], [0, 0, 1, 1], [], []>} : vector<128x128xbf16>, vector<128x128xbf16>, vector<128x128xf32> -> vector<128x128xf32>
    %c0_13 = arith.constant 0 : index
    %c0_14 = arith.constant 0 : index
    %16 = vector.load %arg5[%c0_13, %c0_14] : memref<1x128xf32, #tpu.memory_space<vmem>>, vector<1x128xf32>
    %17 = vector.broadcast %16 : vector<1x128xf32> to vector<128x128xf32>
    %18 = arith.addf %15, %17 : vector<128x128xf32>
    %cst_15 = arith.constant 0.000000e+00 : f32
    %19 = vector.broadcast %cst_15 : f32 to vector<128x128xf32>
    %20 = arith.maximumf %18, %19 : vector<128x128xf32>
    %c0_16 = arith.constant 0 : index
    %c0_17 = arith.constant 0 : index
    %21 = vector.load %arg10[%c0_16, %c0_17] : memref<128x128xf32, #tpu.memory_space<vmem>>, vector<128x128xf32>
    tpu.vector_store %arg10[%c0_16, %c0_17], %20 {strides = array<i32>} : memref<128x128xf32, #tpu.memory_space<vmem>>, vector<128x128xf32>,
    %22 = arith.truncf %20 : vector<128x128xf32> to vector<128x128xbf16>
    %c0_18 = arith.constant 0 : index
    %c0_19 = arith.constant 0 : index
    %23 = vector.load %arg6[%c0_18, %c0_19] : memref<128x128xbf16, #tpu.memory_space<vmem>>, vector<128x128xbf16>
    %cst_20 = arith.constant dense<0.000000e+00> : vector<128x128xf32>
    %24 = tpu.matmul %22, %23, %cst_20 {dimension_numbers = #tpu.dot_dimension_numbers<[1], [0], [0], [1], [0, 0, 1, 1], [], []>} : vector<128x128xbf16>, vector<128x128xbf16>, vector<128x128xf32> -> vector<128x128xf32>
    %25 = arith.truncf %24 : vector<128x128xf32> to vector<128x128xbf16>
    %cst_21 = arith.constant dense<0.000000e+00> : vector<128x128xf32>
    %26 = tpu.matmul %0, %25, %cst_21 {dimension_numbers = #tpu.dot_dimension_numbers<[1], [0], [0], [1], [0, 0, 1, 1], [], []>} : vector<128x128xbf16>, vector<128x128xbf16>, vector<128x128xf32> -> vector<128x128xf32>
    %c0_22 = arith.constant 0 : index
    %c0_23 = arith.constant 0 : index
    %27 = vector.load %arg7[%c0_22, %c0_23] : memref<1x128xf32, #tpu.memory_space<vmem>>, vector<1x128xf32>
    %28 = vector.broadcast %27 : vector<1x128xf32> to vector<128x128xf32>
    %29 = arith.addf %26, %28 : vector<128x128xf32>
    %cst_24 = arith.constant 0.000000e+00 : f32
    %30 = vector.broadcast %cst_24 : f32 to vector<128x128xf32>
    %31 = arith.maximumf %29, %30 : vector<128x128xf32>
    %32 = arith.truncf %31 : vector<128x128xf32> to vector<128x128xbf16>
    %c0_25 = arith.constant 0 : index
    %c0_26 = arith.constant 0 : index
    %33 = vector.load %arg8[%c0_25, %c0_26] : memref<128x128xbf16, #tpu.memory_space<vmem>>, vector<128x128xbf16>
    %cst_27 = arith.constant dense<0.000000e+00> : vector<128x128xf32>
    %34 = tpu.matmul %32, %33, %cst_27 {dimension_numbers = #tpu.dot_dimension_numbers<[1], [0], [0], [1], [0, 0, 1, 1], [], []>} : vector<128x128xbf16>, vector<128x128xbf16>, vector<128x128xf32> -> vector<128x128xf32>
    %35 = arith.truncf %34 : vector<128x128xf32> to vector<128x128xbf16>
    %cst_28 = arith.constant dense<0.000000e+00> : vector<128x128xf32>
    %36 = tpu.matmul %0, %35, %cst_28 {dimension_numbers = #tpu.dot_dimension_numbers<[1], [0], [0], [1], [0, 0, 1, 1], [], []>} : vector<128x128xbf16>, vector<128x128xbf16>, vector<128x128xf32> -> vector<128x128xf32>
    %c0_29 = arith.constant 0 : index
    %c0_30 = arith.constant 0 : index
    %37 = vector.load %arg9[%c0_29, %c0_30] : memref<1x128xf32, #tpu.memory_space<vmem>>, vector<1x128xf32>
    %38 = vector.broadcast %37 : vector<1x128xf32> to vector<128x128xf32>
    %39 = arith.addf %36, %38 : vector<128x128xf32>
    %cst_31 = arith.constant 0.000000e+00 : f32
    %40 = vector.broadcast %cst_31 : f32 to vector<128x128xf32>
    %41 = arith.maximumf %39, %40 : vector<128x128xf32>
    %c0_32 = arith.constant 0 : index
    %c0_33 = arith.constant 0 : index
    %42 = vector.load %arg11[%c0_32, %c0_33] : memref<128x128xf32, #tpu.memory_space<vmem>>, vector<128x128xf32>
    tpu.vector_store %arg11[%c0_32, %c0_33], %41 {strides = array<i32>} : memref<128x128xf32, #tpu.memory_space<vmem>>, vector<128x128xf32>,
    return
  }
}

</mosaic_0001>

<bundles_post_ra>
// kernel: student_forward.1
= control target key start
LH: loop header
LB: loop body
LE: loop exit
PB: predicated region body
PF: predicated region fallthrough
CT: control target
= control target key end

     0   :  { %17 = vsyncpa [#allocation3], 0  ;;  %s2658_s0 = inlined_call_operand.hbm [shape: bf16[128,128], index: 0, kind: input, shape index: {}]   ;;  %s2659_s1 = inlined_call_operand.hbm [shape: bf16[128,128], index: 1, kind: input, shape index: {}]   ;;  %s2660_s2 = inlined_call_operand.hbm [shape: bf16[128,128], index: 2, kind: input, shape index: {}]   ;;  %s2661_s3 = inlined_call_operand.hbm [shape: f32[1,128], index: 3, kind: input, shape index: {}]   ;;  %s2662_s4 = inlined_call_operand.hbm [shape: bf16[128,128], index: 4, kind: input, shape index: {}]   ;;  %s2663_s5 = inlined_call_operand.hbm [shape: f32[1,128], index: 5, kind: input, shape index: {}]   ;;  %s2664_s6 = inlined_call_operand.hbm [shape: bf16[128,128], index: 6, kind: input, shape index: {}]   ;;  %s2665_s7 = inlined_call_operand.hbm [shape: f32[1,128], index: 7, kind: input, shape index: {}]   ;;  %s2666_s8 = inlined_call_operand.hbm [shape: bf16[128,128], index: 8, kind: input, shape index: {}]   ;;  %s2667_s9 = inlined_call_operand.hbm [shape: f32[1,128], index: 9, kind: input, shape index: {}]   ;;  %s2668_s10 = inlined_call_operand.hbm [shape: f32[128,128], index: 10, kind: output, shape index: {0}]   ;;  %s2669_s11 = inlined_call_operand.hbm [shape: f32[128,128], index: 11, kind: output, shape index: {1}]  }
   0x1   :  { %18 = vsyncpa [#allocation6], 0 }
   0x2   :  { %19 = vsyncpa [#allocation9], 0 }
   0x3   :  { %20 = vsyncpa [#allocation12], 0 }
   0x4   :  { %21 = vsyncpa [#allocation15], 0 }
   0x5   :  { %22 = vsyncpa [#allocation18], 0 }
   0x6   :  { %23 = vsyncpa [#allocation4], 0 }
   0x7   :  { %24 = vsyncpa [#allocation21], 0  ;;  %s2326_s17 = smov [#allocation5]   ;;  %s2327_s19 = smov [#allocation8]  }
   0x8   :  { %s42_s18 = sshll.u32 %s2326_s17, 4  ;;  %s67_s20 = sshll.u32 %s2327_s19, 4  ;;  %s43_s18 = int_to_ptr.vmem [resolvable:$true] %s42_s18  ;;  %s2402_s20 = int_to_ptr.vmem [resolvable:$true] %s67_s20 }
   0x9   :  { %s2046_s23 = scalar_lea.hbm %s2659_s1, 1024 }
   0xa   :  { %p2047_p0 = scmp.ne.s32.totalorder %s2659_s1, %s2046_s23  ;;  %p2050_p1 = scmp.lt.u32.totalorder %s2046_s23, %s2659_s1 }
   0xc   :  { %p2052_p2 = pnand %p2050_p1, %p2047_p0 }
   0xe   :  { %2055 = shalt.err (!%p2052_p2)
}
   0xf   :  { %s2056_s28 = scalar_lea.vmem %s43_s18, 1024  ;;  %p2061_p4 = scmp.lt.s32.totalorder %s43_s18, %s43_s18 }
  0x10   :  { %p2057_p3 = scmp.ne.s32.totalorder %s43_s18, %s2056_s28  ;;  %p2062_p5 = scmp.lt.s32.totalorder %s2056_s28, %s2056_s28 }
  0x12   :  { %p2063_p6 = por %p2062_p5, %p2061_p4 }
  0x14   :  { %p2064_p7 = pnand %p2063_p6, %p2057_p3 }
  0x16   :  { %2067 = shalt.err (!%p2064_p7)
}
  0x17   :  { %s2328_s29 = smov 64   ;;  %s2329_s30 = smov 4  }
  0x18   :  { %48 = dma.hbm_to_vmem [thread:$0]  %s2659_s1, 1024, %s43_s18, [#allocation6], %s2328_s29, %s2328_s29, %s2329_s30  }
  0x19   :  { %s2068_s16 = scalar_lea.hbm %s2661_s3, 16 }
  0x1a   :  { %p2069_p8 = scmp.ne.s32.totalorder %s2661_s3, %s2068_s16  ;;  %p2072_p9 = scmp.lt.u32.totalorder %s2068_s16, %s2661_s3 }
  0x1c   :  { %p2074_p10 = pnand %p2072_p9, %p2069_p8 }
  0x1e   :  { %2077 = shalt.err (!%p2074_p10)
}
  0x1f   :  { %s2078_s23 = scalar_lea.vmem %s2402_s20, 16  ;;  %s2082_s1 = scalar_lea.vmem %s2402_s20, 32 }
  0x20   :  { %p2079_p11 = scmp.ne.s32.totalorder %s2402_s20, %s2078_s23  ;;  %p2083_p12 = scmp.lt.s32.totalorder %s2402_s20, %s2402_s20 }
  0x21   :  { %p2084_p13 = scmp.lt.s32.totalorder %s2082_s1, %s2078_s23 }
  0x23   :  { %p2085_p0 = por %p2084_p13, %p2083_p12 }
  0x25   :  { %p2086_p1 = pnand %p2085_p0, %p2079_p11 }
  0x27   :  { %2089 = shalt.err (!%p2086_p1)
}
  0x28   :  { %70 = dma.hbm_to_vmem [thread:$0]  %s2661_s3, 16, %s2402_s20, [#allocation9]  }
  0x29   :  { %s2330_s25 = smov [#allocation11]   ;;  %s2331_s27 = smov [#allocation14]  }
  0x2a   :  { %s89_s26 = sshll.u32 %s2330_s25, 4  ;;  %s111_s28 = sshll.u32 %s2331_s27, 4  ;;  %s90_s26 = int_to_ptr.vmem [resolvable:$true] %s89_s26  ;;  %s112_s28 = int_to_ptr.vmem [resolvable:$true] %s111_s28 }
  0x2b   :  { %s2090_s14 = scalar_lea.hbm %s2663_s5, 16 }
  0x2c   :  { %p2091_p2 = scmp.ne.s32.totalorder %s2663_s5, %s2090_s14  ;;  %p2094_p3 = scmp.lt.u32.totalorder %s2090_s14, %s2663_s5 }
  0x2e   :  { %p2096_p4 = pnand %p2094_p3, %p2091_p2 }
  0x30   :  { %2099 = shalt.err (!%p2096_p4)
}
  0x31   :  { %s2100_s3 = scalar_lea.vmem %s90_s26, 16  ;;  %s2104_s20 = scalar_lea.vmem %s90_s26, 32 }
  0x32   :  { %p2101_p5 = scmp.ne.s32.totalorder %s90_s26, %s2100_s3  ;;  %p2105_p6 = scmp.lt.s32.totalorder %s90_s26, %s90_s26 }
  0x33   :  { %p2106_p7 = scmp.lt.s32.totalorder %s2104_s20, %s2100_s3 }
  0x35   :  { %p2107_p8 = por %p2106_p7, %p2105_p6 }
  0x37   :  { %p2108_p9 = pnand %p2107_p8, %p2101_p5 }
  0x39   :  { %2111 = shalt.err (!%p2108_p9)
}
  0x3a   :  { %92 = dma.hbm_to_vmem [thread:$0]  %s2663_s5, 16, %s90_s26, [#allocation12]  }
  0x3b   :  { %s2112_s18 = scalar_lea.hbm %s2665_s7, 16 }
  0x3c   :  { %p2113_p10 = scmp.ne.s32.totalorder %s2665_s7, %s2112_s18  ;;  %p2116_p11 = scmp.lt.u32.totalorder %s2112_s18, %s2665_s7 }
  0x3e   :  { %p2118_p12 = pnand %p2116_p11, %p2113_p10 }
  0x40   :  { %2121 = shalt.err (!%p2118_p12)
}
  0x41   :  { %s2122_s13 = scalar_lea.vmem %s112_s28, 16  ;;  %s2126_s14 = scalar_lea.vmem %s112_s28, 32 }
  0x42   :  { %p2123_p13 = scmp.ne.s32.totalorder %s112_s28, %s2122_s13  ;;  %p2127_p0 = scmp.lt.s32.totalorder %s112_s28, %s112_s28 }
  0x43   :  { %p2128_p1 = scmp.lt.s32.totalorder %s2126_s14, %s2122_s13 }
  0x45   :  { %p2129_p2 = por %p2128_p1, %p2127_p0 }
  0x47   :  { %p2130_p3 = pnand %p2129_p2, %p2123_p13 }
  0x49   :  { %2133 = shalt.err (!%p2130_p3)
}
  0x4a   :  { %114 = dma.hbm_to_vmem [thread:$0]  %s2665_s7, 16, %s112_s28, [#allocation15]  }
  0x4b   :  { %s2332_s15 = smov [#allocation2]   ;;  %s2333_s17 = smov [#allocation7]  }
  0x4c   :  { %s30_s16 = sshll.u32 %s2332_s15, 4  ;;  %s54_s19 = sshll.u32 %s2333_s17, 4  ;;  %s31_s16 = int_to_ptr.vmem [resolvable:$true] %s30_s16  ;;  %s2461_s19 = int_to_ptr.vmem [resolvable:$true] %s54_s19 }
  0x4d   :  { %s2134_s21 = scalar_lea.hbm %s2658_s0, 1024 }
  0x4e   :  { %p2135_p4 = scmp.ne.s32.totalorder %s2658_s0, %s2134_s21  ;;  %p2138_p5 = scmp.lt.u32.totalorder %s2134_s21, %s2658_s0 }
  0x50   :  { %p2140_p6 = pnand %p2138_p5, %p2135_p4 }
  0x52   :  { %2143 = shalt.err (!%p2140_p6)
}
  0x53   :  { %s2144_s7 = scalar_lea.vmem %s31_s16, 1024  ;;  %p2149_p8 = scmp.lt.s32.totalorder %s31_s16, %s31_s16 }
  0x54   :  { %p2145_p7 = scmp.ne.s32.totalorder %s31_s16, %s2144_s7  ;;  %p2150_p9 = scmp.lt.s32.totalorder %s2144_s7, %s2144_s7 }
  0x56   :  { %p2151_p10 = por %p2150_p9, %p2149_p8 }
  0x58   :  { %p2152_p11 = pnand %p2151_p10, %p2145_p7 }
  0x5a   :  { %2155 = shalt.err (!%p2152_p11)
}
  0x5b   :  { %36 = dma.hbm_to_vmem [thread:$0]  %s2658_s0, 1024, %s31_s16, [#allocation3], %s2328_s29, %s2328_s29, %s2329_s30  }
  0x5c   :  { %s2156_s12 = scalar_lea.hbm %s2660_s2, 1024 }
  0x5d   :  { %p2157_p12 = scmp.ne.s32.totalorder %s2660_s2, %s2156_s12  ;;  %p2160_p13 = scmp.lt.u32.totalorder %s2156_s12, %s2660_s2 }
  0x5f   :  { %p2162_p0 = pnand %p2160_p13, %p2157_p12 }
  0x61   :  { %2165 = shalt.err (!%p2162_p0)
}
  0x62   :  { %s2166_s15 = scalar_lea.vmem %s2461_s19, 1024  ;;  %p2171_p2 = scmp.lt.s32.totalorder %s2461_s19, %s2461_s19 }
  0x63   :  { %p2167_p1 = scmp.ne.s32.totalorder %s2461_s19, %s2166_s15  ;;  %p2172_p3 = scmp.lt.s32.totalorder %s2166_s15, %s2166_s15 }
  0x65   :  { %p2173_p4 = por %p2172_p3, %p2171_p2 }
  0x67   :  { %p2174_p5 = pnand %p2173_p4, %p2167_p1 }
  0x69   :  { %2177 = shalt.err (!%p2174_p5)
}
  0x6a   :  { %60 = dma.hbm_to_vmem [thread:$0]  %s2660_s2, 1024, %s2461_s19, [#allocation6], %s2328_s29, %s2328_s29, %s2329_s30  }
  0x6b   :  { %s2334_s17 = smov [#allocation10]   ;;  %s2335_s20 = smov [#allocation13]  }
  0x6c   :  { %s76_s3 = sshll.u32 %s2334_s17, 4  ;;  %s98_s21 = sshll.u32 %s2335_s20, 4  ;;  %s77_s3 = int_to_ptr.vmem [resolvable:$true] %s76_s3  ;;  %s2498_s21 = int_to_ptr.vmem [resolvable:$true] %s98_s21 }
  0x6d   :  { %s2178_s1 = scalar_lea.hbm %s2662_s4, 1024 }
  0x6e   :  { %p2179_p6 = scmp.ne.s32.totalorder %s2662_s4, %s2178_s1  ;;  %p2182_p7 = scmp.lt.u32.totalorder %s2178_s1, %s2662_s4 }
  0x70   :  { %p2184_p8 = pnand %p2182_p7, %p2179_p6 }
  0x72   :  { %2187 = shalt.err (!%p2184_p8)
}
  0x73   :  { %s2188_s2 = scalar_lea.vmem %s77_s3, 1024  ;;  %p2193_p10 = scmp.lt.s32.totalorder %s77_s3, %s77_s3 }
  0x74   :  { %p2189_p9 = scmp.ne.s32.totalorder %s77_s3, %s2188_s2  ;;  %p2194_p11 = scmp.lt.s32.totalorder %s2188_s2, %s2188_s2 }
  0x76   :  { %p2195_p12 = por %p2194_p11, %p2193_p10 }
  0x78   :  { %p2196_p13 = pnand %p2195_p12, %p2189_p9 }
  0x7a   :  { %2199 = shalt.err (!%p2196_p13)
}
  0x7b   :  { %82 = dma.hbm_to_vmem [thread:$0]  %s2662_s4, 1024, %s77_s3, [#allocation9], %s2328_s29, %s2328_s29, %s2329_s30  }
  0x7c   :  { %s2200_s13 = scalar_lea.hbm %s2664_s6, 1024 }
  0x7d   :  { %p2201_p0 = scmp.ne.s32.totalorder %s2664_s6, %s2200_s13  ;;  %p2204_p1 = scmp.lt.u32.totalorder %s2200_s13, %s2664_s6 }
  0x7f   :  { %p2206_p2 = pnand %p2204_p1, %p2201_p0 }
  0x81   :  { %2209 = shalt.err (!%p2206_p2)
}
  0x82   :  { %s2210_s0 = scalar_lea.vmem %s2498_s21, 1024  ;;  %p2215_p4 = scmp.lt.s32.totalorder %s2498_s21, %s2498_s21 }
  0x83   :  { %p2211_p3 = scmp.ne.s32.totalorder %s2498_s21, %s2210_s0  ;;  %p2216_p5 = scmp.lt.s32.totalorder %s2210_s0, %s2210_s0 }
  0x85   :  { %p2217_p6 = por %p2216_p5, %p2215_p4 }
  0x87   :  { %p2218_p7 = pnand %p2217_p6, %p2211_p3 }
  0x89   :  { %2221 = shalt.err (!%p2218_p7)
}
  0x8a   :  { %104 = dma.hbm_to_vmem [thread:$0]  %s2664_s6, 1024, %s2498_s21, [#allocation12], %s2328_s29, %s2328_s29, %s2329_s30  }
  0x8b   :  { %s2336_s17 = smov [#allocation16]   ;;  %s2337_s20 = smov [#allocation17]  }
  0x8c   :  { %s120_s3 = sshll.u32 %s2336_s17, 4  ;;  %s133_s22 = sshll.u32 %s2337_s20, 4  ;;  %s121_s3 = int_to_ptr.vmem [resolvable:$true] %s120_s3  ;;  %s134_s22 = int_to_ptr.vmem [resolvable:$true] %s133_s22 }
  0x8d   :  { %s2222_s18 = scalar_lea.hbm %s2666_s8, 1024 }
  0x8e   :  { %p2223_p8 = scmp.ne.s32.totalorder %s2666_s8, %s2222_s18  ;;  %p2226_p9 = scmp.lt.u32.totalorder %s2222_s18, %s2666_s8 }
  0x90   :  { %p2228_p10 = pnand %p2226_p9, %p2223_p8 }
  0x92   :  { %2231 = shalt.err (!%p2228_p10)
}
  0x93   :  { %s2232_s6 = scalar_lea.vmem %s121_s3, 1024  ;;  %p2237_p12 = scmp.lt.s32.totalorder %s121_s3, %s121_s3 }
  0x94   :  { %p2233_p11 = scmp.ne.s32.totalorder %s121_s3, %s2232_s6  ;;  %p2238_p13 = scmp.lt.s32.totalorder %s2232_s6, %s2232_s6 }
  0x96   :  { %p2239_p0 = por %p2238_p13, %p2237_p12 }
  0x98   :  { %p2240_p1 = pnand %p2239_p0, %p2233_p11 }
  0x9a   :  { %2243 = shalt.err (!%p2240_p1)
}
  0x9b   :  { %126 = dma.hbm_to_vmem [thread:$0]  %s2666_s8, 1024, %s121_s3, [#allocation15], %s2328_s29, %s2328_s29, %s2329_s30  }
  0x9c   :  { %s2244_s12 = scalar_lea.hbm %s2667_s9, 16 }
  0x9d   :  { %p2245_p2 = scmp.ne.s32.totalorder %s2667_s9, %s2244_s12  ;;  %p2248_p3 = scmp.lt.u32.totalorder %s2244_s12, %s2667_s9 }
  0x9f   :  { %p2250_p4 = pnand %p2248_p3, %p2245_p2 }
  0xa1   :  { %2253 = shalt.err (!%p2250_p4)
}
  0xa2   :  { %s2254_s15 = scalar_lea.vmem %s134_s22, 16  ;;  %s2258_s0 = scalar_lea.vmem %s134_s22, 32 }
  0xa3   :  { %p2255_p5 = scmp.ne.s32.totalorder %s134_s22, %s2254_s15  ;;  %p2259_p6 = scmp.lt.s32.totalorder %s134_s22, %s134_s22 }
  0xa4   :  { %p2260_p7 = scmp.lt.s32.totalorder %s2258_s0, %s2254_s15 }
  0xa6   :  { %p2261_p8 = por %p2260_p7, %p2259_p6 }
  0xa8   :  { %p2262_p9 = pnand %p2261_p8, %p2255_p5 }
  0xaa   :  { %2265 = shalt.err (!%p2262_p9)
}
  0xab   :  { %136 = dma.hbm_to_vmem [thread:$0]  %s2667_s9, 16, %s134_s22, [#allocation18]  }
  0xac   :  { %2310 = dma.done.wait [#allocation3], 1024  }
  0xad   :  { %2311 = vsyncadd [#allocation3], 4294966272 }
  0xae   :  { %2312 = dma.done.wait [#allocation6], 2048  }
  0xaf   :  { %2313 = vsyncadd [#allocation6], 4294965248 }
  0xb0   :  { %2314 = dma.done.wait [#allocation9], 1040  }
  0xb1   :  { %2315 = vsyncadd [#allocation9], 4294966256 }
  0xb2   :  { %2316 = dma.done.wait [#allocation12], 1040  }
  0xb3   :  { %2317 = vsyncadd [#allocation12], 4294966256 }
  0xb4   :  { %2318 = dma.done.wait [#allocation15], 1040  }
  0xb5   :  { %2319 = vsyncadd [#allocation15], 4294966256 }
  0xb6   :  { %2320 = dma.done.wait [#allocation18], 16  }
  0xb7   :  { %2321 = vsyncadd [#allocation18], 4294967280  ;;  %v1998_v0 = vld [vmem:[#allocation7] sm:$0xff]   ;;  %v1999_v1 = vld [vmem:[#allocation7 + $0x8] sm:$0xff]   ;;  %s2338_s9 = smov [#allocation19]  }
  0xb8   :  { %1726 = vmatprep.subr.bf16.mxu0 %v1998_v0  ;;  %v2000_v2 = vld [vmem:[#allocation7 + $0x10] sm:$0xff]   ;;  %v2001_v3 = vld [vmem:[#allocation7 + $0x18] sm:$0xff]   ;;  %v2006_v4 = vld [vmem:[#allocation2] sm:$0xff]   ;;  %s1513_s30 = sshll.u32 %s2338_s9, 4  ;;  %s1514_s30 = int_to_ptr.vmem [resolvable:$true] %s1513_s30 }
  0xb9   :  { %1727 = vmatpush3.bf16.msra.mxu0 %v1998_v0  ;;  %1742 = vmatprep.mubr.bf16.mxu0 %v2006_v4  ;;  %v2002_v5 = vld [vmem:[#allocation7 + $0x20] sm:$0xff]   ;;  %v2003_v6 = vld [vmem:[#allocation7 + $0x28] sm:$0xff]   ;;  %v2004_v7 = vld [vmem:[#allocation7 + $0x30] sm:$0xff]   ;;  %s2266_s4 = scalar_lea.vmem %s1514_s30, 2048  ;;  %p2271_p11 = scmp.lt.s32.totalorder %s1514_s30, %s1514_s30 }
  0xba   :  { %1728 = vmatprep.subr.bf16.mxu0 %v1999_v1  ;;  %v2005_v8 = vld [vmem:[#allocation7 + $0x38] sm:$0xff]   ;;  %v2007_v9 = vld [vmem:[#allocation2 + $0x8] sm:$0xff]   ;;  %v2008_v10 = vld [vmem:[#allocation2 + $0x10] sm:$0xff]   ;;  %p2267_p10 = scmp.ne.s32.totalorder %s1514_s30, %s2266_s4  ;;  %p2272_p12 = scmp.lt.s32.totalorder %s2266_s4, %s2266_s4 }
  0xbb   :  { %v2009_v11 = vld [vmem:[#allocation2 + $0x18] sm:$0xff]   ;;  %v2010_v12 = vld [vmem:[#allocation2 + $0x20] sm:$0xff]   ;;  %v2011_v13 = vld [vmem:[#allocation2 + $0x28] sm:$0xff]  }
  0xbc   :  { %v2012_v14 = vld [vmem:[#allocation2 + $0x30] sm:$0xff]   ;;  %v2013_v15 = vld [vmem:[#allocation2 + $0x38] sm:$0xff]   ;;  %v2562_v16 = vld [vmem:[#allocation5] sm:$0xff]   ;;  %p2273_p13 = por %p2272_p12, %p2271_p11 }
  0xbd   :  { %1729 = vmatpush3.bf16.msra.mxu0 %v1999_v1  ;;  %1774 = vmatprep.mubr.bf16.mxu1 %v2562_v16  ;;  %v2022_v17 = vld [vmem:[#allocation10] sm:$0xff]   ;;  %v2023_v18 = vld [vmem:[#allocation10 + $0x8] sm:$0xff]   ;;  %v2024_v19 = vld [vmem:[#allocation10 + $0x10] sm:$0xff]  }
  0xbe   :  { %1730 = vmatprep.subr.bf16.mxu0 %v2000_v2  ;;  %v2025_v20 = vld [vmem:[#allocation10 + $0x18] sm:$0xff]   ;;  %v2026_v21 = vld [vmem:[#allocation10 + $0x20] sm:$0xff]   ;;  %v2027_v22 = vld [vmem:[#allocation10 + $0x28] sm:$0xff]   ;;  %p2274_p0 = pnand %p2273_p13, %p2267_p10 }
  0xbf   :  { %v2565_v47 = vld [vmem:[#allocation5 + $0x8] sm:$0xff]   ;;  %v2567_v48 = vld [vmem:[#allocation5 + $0x10] sm:$0xff]   ;;  %v2571_v49 = vld [vmem:[#allocation5 + $0x18] sm:$0xff]  }
  0xc0   :  { %v2573_v50 = vld [vmem:[#allocation5 + $0x20] sm:$0xff]   ;;  %v2577_v51 = vld [vmem:[#allocation5 + $0x28] sm:$0xff]   ;;  %v2579_v52 = vld [vmem:[#allocation5 + $0x30] sm:$0xff]  }
  0xc1   :  { %1731 = vmatpush3.bf16.msra.mxu0 %v2000_v2  ;;  %v2583_v53 = vld [vmem:[#allocation5 + $0x38] sm:$0xff]   ;;  %v1562_v56 = vld [vmem:[#allocation8] ss:$0 sm:$0xff] }
  0xc2   :  { %1732 = vmatprep.subr.bf16.mxu0 %v2001_v3  ;;  %v2028_v54 = vld [vmem:[#allocation10 + $0x30] sm:$0xff]   ;;  %v2029_v55 = vld [vmem:[#allocation10 + $0x38] sm:$0xff]  }
  0xc5   :  { %1733 = vmatpush3.bf16.msra.mxu0 %v2001_v3 }
  0xc6   :  { %1734 = vmatprep.subr.bf16.mxu0 %v2002_v5 }
  0xc9   :  { %1735 = vmatpush3.bf16.msra.mxu0 %v2002_v5 }
  0xca   :  { %1736 = vmatprep.subr.bf16.mxu0 %v2003_v6 }
  0xcd   :  { %1737 = vmatpush3.bf16.msra.mxu0 %v2003_v6 }
  0xce   :  { %1738 = vmatprep.subr.bf16.mxu0 %v2004_v7 }
  0xd1   :  { %1739 = vmatpush3.bf16.msra.mxu0 %v2004_v7 }
  0xd2   :  { %1740 = vmatprep.subr.bf16.mxu0 %v2005_v8 }
  0xd5   :  { %1741 = vmatpush3.bf16.msra.mxu0 %v2005_v8 }
  0xd6   :  { %1790 = vmatprep.subr.bf16.mxu0 %v2022_v17 }
  0xd8   :  { %1743 = vmatmul.mubr.bf16.vlgmr.msra.gmra.mrb[0].mxu0 %v2007_v9 }
  0xd9   :  { %1746 = vmatprep.mubr.bf16.mxu0 %v2008_v10  ;;  %1791 = vmatpush3.bf16.msra.mxu0 %v2022_v17 }
  0xda   :  { %1792 = vmatprep.subr.bf16.mxu0 %v2023_v18 }
  0xdd   :  { %1793 = vmatpush3.bf16.msra.mxu0 %v2023_v18 }
  0xde   :  { %1794 = vmatprep.subr.bf16.mxu0 %v2024_v19 }
  0xe0   :  { %1747 = vmatmul.mubr.bf16.gmra.mrb[4].mxu0 %v2009_v11 }
  0xe1   :  { %1750 = vmatprep.mubr.bf16.mxu0 %v2010_v12  ;;  %1795 = vmatpush3.bf16.msra.mxu0 %v2024_v19 }
  0xe2   :  { %1796 = vmatprep.subr.bf16.mxu0 %v2025_v20 }
  0xe5   :  { %1797 = vmatpush3.bf16.msra.mxu0 %v2025_v20 }
  0xe6   :  { %1798 = vmatprep.subr.bf16.mxu0 %v2026_v21 }
  0xe8   :  { %1751 = vmatmul.mubr.bf16.gmra.mrb[8].mxu0 %v2011_v13 }
  0xe9   :  { %1754 = vmatprep.mubr.bf16.mxu0 %v2012_v14  ;;  %1799 = vmatpush3.bf16.msra.mxu0 %v2026_v21 }
  0xea   :  { %1800 = vmatprep.subr.bf16.mxu0 %v2027_v22 }
  0xed   :  { %1801 = vmatpush3.bf16.msra.mxu0 %v2027_v22 }
  0xee   :  { %1802 = vmatprep.subr.bf16.mxu0 %v2028_v54 }
  0xf0   :  { %1755 = vmatmul.mubr.bf16.gmra.mrb[12].mxu0 %v2013_v15 }
  0xf1   :  { %1803 = vmatpush3.bf16.msra.mxu0 %v2028_v54 }
  0xf2   :  { %1804 = vmatprep.subr.bf16.mxu0 %v2029_v55 }
  0xf5   :  { %1805 = vmatpush3.bf16.msra.mxu0 %v2029_v55 }
 0x1ab   :  { %v1744_v23 = vpop.f32.mrb[0].mxu0 }
 0x1ac   :  { %v346_v24 = vpop.f32.mrb[1].mxu0 }
 0x1ad   :  { %v1745_v25 = vpop.f32.mrb[2].mxu0 }
 0x1ae   :  { %v410_v26 = vpack.c.bf16 %v1745_v25, %v1744_v23  ;;  %v349_v27 = vpop.f32.mrb[3].mxu0 }
 0x1af   :  { %v409_v28 = vpack.c.bf16 %v349_v27, %v346_v24 }
 0x1b1   :  { %1758 = vmatprep.subr.bf16.mxu1 %v409_v28 }
 0x1b2   :  { %1759 = vmatpush3.bf16.msra.mxu1 %v409_v28 }
 0x1b3   :  { %v1748_v29 = vpop.f32.mrb[4].mxu0  ;;  %1760 = vmatprep.subr.bf16.mxu1 %v410_v26 }
 0x1b4   :  { %v362_v30 = vpop.f32.mrb[5].mxu0 }
 0x1b5   :  { %v1749_v31 = vpop.f32.mrb[6].mxu0 }
 0x1b6   :  { %v412_v32 = vpack.c.bf16 %v1749_v31, %v1748_v29  ;;  %v365_v33 = vpop.f32.mrb[7].mxu0  ;;  %1761 = vmatpush3.bf16.msra.mxu1 %v410_v26 }
 0x1b7   :  { %v411_v34 = vpack.c.bf16 %v365_v33, %v362_v30 }
 0x1b9   :  { %1762 = vmatprep.subr.bf16.mxu1 %v411_v34 }
 0x1ba   :  { %1763 = vmatpush3.bf16.msra.mxu1 %v411_v34 }
 0x1bb   :  { %v1752_v35 = vpop.f32.mrb[8].mxu0  ;;  %1764 = vmatprep.subr.bf16.mxu1 %v412_v32 }
 0x1bc   :  { %v378_v36 = vpop.f32.mrb[9].mxu0 }
 0x1bd   :  { %v1753_v37 = vpop.f32.mrb[10].mxu0 }
 0x1be   :  { %v414_v38 = vpack.c.bf16 %v1753_v37, %v1752_v35  ;;  %v381_v39 = vpop.f32.mrb[11].mxu0  ;;  %1765 = vmatpush3.bf16.msra.mxu1 %v412_v32 }
 0x1bf   :  { %v413_v40 = vpack.c.bf16 %v381_v39, %v378_v36 }
 0x1c1   :  { %1766 = vmatprep.subr.bf16.mxu1 %v413_v40 }
 0x1c2   :  { %1767 = vmatpush3.bf16.msra.mxu1 %v413_v40 }
 0x1c3   :  { %v1756_v41 = vpop.f32.mrb[12].mxu0  ;;  %1768 = vmatprep.subr.bf16.mxu1 %v414_v38 }
 0x1c4   :  { %v394_v42 = vpop.f32.mrb[13].mxu0 }
 0x1c5   :  { %v1757_v43 = vpop.f32.mrb[14].mxu0 }
 0x1c6   :  { %v416_v44 = vpack.c.bf16 %v1757_v43, %v1756_v41  ;;  %v397_v45 = vpop.f32.mrb[15].mxu0  ;;  %1769 = vmatpush3.bf16.msra.mxu1 %v414_v38 }
 0x1c7   :  { %v415_v46 = vpack.c.bf16 %v397_v45, %v394_v42 }
 0x1c9   :  { %1770 = vmatprep.subr.bf16.mxu1 %v415_v46 }
 0x1ca   :  { %1771 = vmatpush3.bf16.msra.mxu1 %v415_v46 }
 0x1cb   :  { %1772 = vmatprep.subr.bf16.mxu1 %v416_v44 }
 0x1ce   :  { %1773 = vmatpush3.bf16.msra.mxu1 %v416_v44 }
 0x1d1   :  { %1775 = vmatmul.mubr.bf16.vlgmr.msra.gmra.mrb[0].mxu1 %v2565_v47 }
 0x1d2   :  { %1778 = vmatprep.mubr.bf16.mxu1 %v2567_v48 }
 0x1d9   :  { %1779 = vmatmul.mubr.bf16.gmra.mrb[4].mxu1 %v2571_v49 }
 0x1da   :  { %1782 = vmatprep.mubr.bf16.mxu1 %v2573_v50 }
 0x1e1   :  { %1783 = vmatmul.mubr.bf16.gmra.mrb[8].mxu1 %v2577_v51 }
 0x1e2   :  { %1786 = vmatprep.mubr.bf16.mxu1 %v2579_v52 }
 0x1e9   :  { %1787 = vmatmul.mubr.bf16.gmra.mrb[12].mxu1 %v2583_v53 }
 0x1ea   :  { %1838 = vmatprep.mubr.bf16.mxu1 %v2562_v16 }
 0x2a4   :  { %v1776_v57 = vpop.f32.mrb[0].mxu1 }
 0x2a5   :  { %v515_v58 = vadd.f32 %v1776_v57, %v1562_v56  ;;  %v506_v59 = vpop.f32.mrb[1].mxu1 }
 0x2a6   :  { %v507_v60 = vadd.f32 %v1562_v56, %v506_v59  ;;  %v1777_v61 = vpop.f32.mrb[2].mxu1  ;;  %v2031_v59 = vld [vmem:[#allocation13 + $0x8] sm:$0xff]  }
 0x2a7   :  { %v518_v62 = vadd.f32 %v1777_v61, %v1562_v56  ;;  %v509_v63 = vpop.f32.mrb[3].mxu1  ;;  %v571_v1 = vmax.f32 %v515_v58, 0.0  ;;  %v2030_v58 = vld [vmem:[#allocation13] sm:$0xff]   ;;  %v2033_v61 = vld [vmem:[#allocation13 + $0x18] sm:$0xff]  }
 0x2a8   :  { %v510_v0 = vadd.f32 %v1562_v56, %v509_v63  ;;  %v569_v3 = vmax.f32 %v507_v60, 0.0  ;;  %1854 = vmatprep.subr.bf16.mxu0 %v2030_v58  ;;  %v2032_v60 = vld [vmem:[#allocation13 + $0x10] sm:$0xff]  }
 0x2a9   :  { %v572_v2 = vmax.f32 %v518_v62, 0.0  ;;  %v2035_v62 = vld [vmem:[#allocation13 + $0x28] sm:$0xff]  }
 0x2aa   :  { %v570_v4 = vmax.f32 %v510_v0, 0.0 }
 0x2ab   :  { %v586_v5 = vpack.c.bf16 %v572_v2, %v571_v1 }
 0x2ac   :  { %v585_v6 = vpack.c.bf16 %v570_v4, %v569_v3  ;;  %v1780_v7 = vpop.f32.mrb[4].mxu1 }
 0x2ad   :  { %v531_v8 = vadd.f32 %v1780_v7, %v1562_v56  ;;  %v522_v9 = vpop.f32.mrb[5].mxu1 }
 0x2ae   :  { %v523_v10 = vadd.f32 %v1562_v56, %v522_v9  ;;  %v1781_v11 = vpop.f32.mrb[6].mxu1  ;;  %1806 = vmatprep.mubr.bf16.mxu0 %v585_v6 }
 0x2af   :  { %v534_v12 = vadd.f32 %v1781_v11, %v1562_v56  ;;  %v525_v13 = vpop.f32.mrb[7].mxu1  ;;  %1807 = vmatmul.mubr.bf16.vlgmr.msra.gmra.mrb[16].mxu0 %v586_v5  ;;  %v575_v15 = vmax.f32 %v531_v8, 0.0 }
 0x2b0   :  { %v526_v14 = vadd.f32 %v1562_v56, %v525_v13  ;;  %v573_v18 = vmax.f32 %v523_v10, 0.0  ;;  %1855 = vmatpush3.bf16.msra.mxu0 %v2030_v58 }
 0x2b1   :  { %v576_v17 = vmax.f32 %v534_v12, 0.0  ;;  %1856 = vmatprep.subr.bf16.mxu0 %v2031_v59 }
 0x2b2   :  { %v574_v19 = vmax.f32 %v526_v14, 0.0 }
 0x2b3   :  { %v588_v20 = vpack.c.bf16 %v576_v17, %v575_v15 }
 0x2b4   :  { %v587_v21 = vpack.c.bf16 %v574_v19, %v573_v18  ;;  %v1784_v22 = vpop.f32.mrb[8].mxu1  ;;  %1857 = vmatpush3.bf16.msra.mxu0 %v2031_v59 }
 0x2b5   :  { %v547_v23 = vadd.f32 %v1784_v22, %v1562_v56  ;;  %v538_v24 = vpop.f32.mrb[9].mxu1  ;;  %1858 = vmatprep.subr.bf16.mxu0 %v2032_v60 }
 0x2b6   :  { %v539_v25 = vadd.f32 %v1562_v56, %v538_v24  ;;  %v1785_v26 = vpop.f32.mrb[10].mxu1  ;;  %1810 = vmatprep.mubr.bf16.mxu0 %v587_v21  ;;  %v2036_v24 = vld [vmem:[#allocation13 + $0x30] sm:$0xff]  }
 0x2b7   :  { %v550_v27 = vadd.f32 %v1785_v26, %v1562_v56  ;;  %v541_v28 = vpop.f32.mrb[11].mxu1  ;;  %1811 = vmatmul.mubr.bf16.gmra.mrb[20].mxu0 %v588_v20  ;;  %v579_v30 = vmax.f32 %v547_v23, 0.0  ;;  %v2595_v26 = vld [vmem:[#allocation11] ss:$0 sm:$0xff] }
 0x2b8   :  { %v542_v29 = vadd.f32 %v1562_v56, %v541_v28  ;;  %v577_v32 = vmax.f32 %v539_v25, 0.0  ;;  %1859 = vmatpush3.bf16.msra.mxu0 %v2032_v60  ;;  %v2037_v25 = vld [vmem:[#allocation13 + $0x38] sm:$0xff]  }
 0x2b9   :  { %v580_v31 = vmax.f32 %v550_v27, 0.0  ;;  %1860 = vmatprep.subr.bf16.mxu0 %v2033_v61 }
 0x2ba   :  { %v578_v33 = vmax.f32 %v542_v29, 0.0 }
 0x2bb   :  { %v590_v34 = vpack.c.bf16 %v580_v31, %v579_v30 }
 0x2bc   :  { %v589_v35 = vpack.c.bf16 %v578_v33, %v577_v32  ;;  %v1788_v36 = vpop.f32.mrb[12].mxu1  ;;  %1861 = vmatpush3.bf16.msra.mxu0 %v2033_v61 }
 0x2bd   :  { %v563_v37 = vadd.f32 %v1788_v36, %v1562_v56  ;;  %v554_v38 = vpop.f32.mrb[13].mxu1 }
 0x2be   :  { %v555_v39 = vadd.f32 %v1562_v56, %v554_v38  ;;  %v1789_v40 = vpop.f32.mrb[14].mxu1  ;;  %1814 = vmatprep.mubr.bf16.mxu0 %v589_v35 }
 0x2bf   :  { %v566_v41 = vadd.f32 %v1789_v40, %v1562_v56  ;;  %v557_v42 = vpop.f32.mrb[15].mxu1  ;;  %1815 = vmatmul.mubr.bf16.gmra.mrb[24].mxu0 %v590_v34  ;;  %v583_v44 = vmax.f32 %v563_v37, 0.0 }
 0x2c0   :  { %v558_v43 = vadd.f32 %v1562_v56, %v557_v42  ;;  %v581_v46 = vmax.f32 %v555_v39, 0.0  ;;  %v2034_v56 = vld [vmem:[#allocation13 + $0x20] sm:$0xff]  }
 0x2c1   :  { %v584_v45 = vmax.f32 %v566_v41, 0.0  ;;  %1862 = vmatprep.subr.bf16.mxu0 %v2034_v56 }
 0x2c2   :  { %v582_v54 = vmax.f32 %v558_v43, 0.0  ;;  %1863 = vmatpush3.bf16.msra.mxu0 %v2034_v56 }
 0x2c3   :  { %v592_v55 = vpack.c.bf16 %v584_v45, %v583_v44  ;;  %1864 = vmatprep.subr.bf16.mxu0 %v2035_v62 }
 0x2c4   :  { %v591_v57 = vpack.c.bf16 %v582_v54, %v581_v46 }
 0x2c6   :  { %1818 = vmatprep.mubr.bf16.mxu0 %v591_v57  ;;  %1865 = vmatpush3.bf16.msra.mxu0 %v2035_v62 }
 0x2c7   :  { %1819 = vmatmul.mubr.bf16.gmra.mrb[28].mxu0 %v592_v55  ;;  %1866 = vmatprep.subr.bf16.mxu0 %v2036_v24 }
 0x2ca   :  { %1867 = vmatpush3.bf16.msra.mxu0 %v2036_v24 }
 0x2cb   :  { %1868 = vmatprep.subr.bf16.mxu0 %v2037_v25 }
 0x2ce   :  { %1869 = vmatpush3.bf16.msra.mxu0 %v2037_v25 }
 0x382   :  { %v1808_v63 = vpop.f32.mrb[16].mxu0 }
 0x383   :  { %v691_v0 = vpop.f32.mrb[17].mxu0 }
 0x384   :  { %v1809_v1 = vpop.f32.mrb[18].mxu0 }
 0x385   :  { %v755_v2 = vpack.c.bf16 %v1809_v1, %v1808_v63  ;;  %v694_v3 = vpop.f32.mrb[19].mxu0 }
 0x386   :  { %v754_v4 = vpack.c.bf16 %v694_v3, %v691_v0 }
 0x388   :  { %1822 = vmatprep.subr.bf16.mxu1 %v754_v4 }
 0x389   :  { %1823 = vmatpush3.bf16.msra.mxu1 %v754_v4 }
 0x38a   :  { %v1812_v5 = vpop.f32.mrb[20].mxu0  ;;  %1824 = vmatprep.subr.bf16.mxu1 %v755_v2 }
 0x38b   :  { %v707_v6 = vpop.f32.mrb[21].mxu0 }
 0x38c   :  { %v1813_v7 = vpop.f32.mrb[22].mxu0 }
 0x38d   :  { %v757_v8 = vpack.c.bf16 %v1813_v7, %v1812_v5  ;;  %v710_v9 = vpop.f32.mrb[23].mxu0  ;;  %1825 = vmatpush3.bf16.msra.mxu1 %v755_v2 }
 0x38e   :  { %v756_v10 = vpack.c.bf16 %v710_v9, %v707_v6 }
 0x390   :  { %1826 = vmatprep.subr.bf16.mxu1 %v756_v10 }
 0x391   :  { %1827 = vmatpush3.bf16.msra.mxu1 %v756_v10 }
 0x392   :  { %v1816_v11 = vpop.f32.mrb[24].mxu0  ;;  %1828 = vmatprep.subr.bf16.mxu1 %v757_v8 }
 0x393   :  { %v723_v12 = vpop.f32.mrb[25].mxu0 }
 0x394   :  { %v1817_v13 = vpop.f32.mrb[26].mxu0 }
 0x395   :  { %v759_v14 = vpack.c.bf16 %v1817_v13, %v1816_v11  ;;  %v726_v15 = vpop.f32.mrb[27].mxu0  ;;  %1829 = vmatpush3.bf16.msra.mxu1 %v757_v8 }
 0x396   :  { %v758_v17 = vpack.c.bf16 %v726_v15, %v723_v12 }
 0x398   :  { %1830 = vmatprep.subr.bf16.mxu1 %v758_v17 }
 0x399   :  { %1831 = vmatpush3.bf16.msra.mxu1 %v758_v17 }
 0x39a   :  { %v1820_v18 = vpop.f32.mrb[28].mxu0  ;;  %1832 = vmatprep.subr.bf16.mxu1 %v759_v14 }
 0x39b   :  { %v739_v19 = vpop.f32.mrb[29].mxu0 }
 0x39c   :  { %v1821_v20 = vpop.f32.mrb[30].mxu0 }
 0x39d   :  { %v761_v21 = vpack.c.bf16 %v1821_v20, %v1820_v18  ;;  %v742_v22 = vpop.f32.mrb[31].mxu0  ;;  %1833 = vmatpush3.bf16.msra.mxu1 %v759_v14 }
 0x39e   :  { %v760_v23 = vpack.c.bf16 %v742_v22, %v739_v19 }
 0x3a0   :  { %1834 = vmatprep.subr.bf16.mxu1 %v760_v23 }
 0x3a1   :  { %1835 = vmatpush3.bf16.msra.mxu1 %v760_v23 }
 0x3a2   :  { %1836 = vmatprep.subr.bf16.mxu1 %v761_v21 }
 0x3a5   :  { %1837 = vmatpush3.bf16.msra.mxu1 %v761_v21 }
 0x3a8   :  { %1839 = vmatmul.mubr.bf16.vlgmr.msra.gmra.mrb[16].mxu1 %v2565_v47 }
 0x3a9   :  { %1842 = vmatprep.mubr.bf16.mxu1 %v2567_v48 }
 0x3b0   :  { %1843 = vmatmul.mubr.bf16.gmra.mrb[20].mxu1 %v2571_v49 }
 0x3b1   :  { %1846 = vmatprep.mubr.bf16.mxu1 %v2573_v50 }
 0x3b8   :  { %1847 = vmatmul.mubr.bf16.gmra.mrb[24].mxu1 %v2577_v51 }
 0x3b9   :  { %1850 = vmatprep.mubr.bf16.mxu1 %v2579_v52 }
 0x3c0   :  { %1851 = vmatmul.mubr.bf16.gmra.mrb[28].mxu1 %v2583_v53 }
 0x3c1   :  { %1902 = vmatprep.mubr.bf16.mxu1 %v2562_v16 }
 0x47b   :  { %v1840_v27 = vpop.f32.mrb[16].mxu1 }
 0x47c   :  { %v812_v28 = vadd.f32 %v1840_v27, %v2595_v26  ;;  %v803_v29 = vpop.f32.mrb[17].mxu1 }
 0x47d   :  { %v804_v30 = vadd.f32 %v2595_v26, %v803_v29  ;;  %v1841_v31 = vpop.f32.mrb[18].mxu1  ;;  %v2039_v29 = vld [vmem:[#allocation16 + $0x8] sm:$0xff]  }
 0x47e   :  { %v868_v32 = vmax.f32 %v812_v28, 0.0  ;;  %v815_v33 = vadd.f32 %v1841_v31, %v2595_v26  ;;  %v806_v34 = vpop.f32.mrb[19].mxu1  ;;  %v2038_v28 = vld [vmem:[#allocation16] sm:$0xff]   ;;  %v2041_v31 = vld [vmem:[#allocation16 + $0x18] sm:$0xff]  }
 0x47f   :  { %v866_v35 = vmax.f32 %v804_v30, 0.0  ;;  %v807_v36 = vadd.f32 %v2595_v26, %v806_v34  ;;  %1918 = vmatprep.subr.bf16.mxu0 %v2038_v28  ;;  %v2040_v30 = vld [vmem:[#allocation16 + $0x10] sm:$0xff]  }
 0x480   :  { %884 = vst [vmem:[#allocation19 + $0x10] sm:$0xff] %v868_v32  ;;  %v869_v37 = vmax.f32 %v815_v33, 0.0 }
 0x481   :  { %882 = vst [vmem:[#allocation19] sm:$0xff] %v866_v35  ;;  %v867_v38 = vmax.f32 %v807_v36, 0.0 }
 0x482   :  { %885 = vst [vmem:[#allocation19 + $0x18] sm:$0xff] %v869_v37  ;;  %v899_v39 = vpack.c.bf16 %v869_v37, %v868_v32  ;;  %v2043_v32 = vld [vmem:[#allocation16 + $0x28] sm:$0xff]  }
 0x483   :  { %883 = vst [vmem:[#allocation19 + $0x8] sm:$0xff] %v867_v38  ;;  %v898_v40 = vpack.c.bf16 %v867_v38, %v866_v35  ;;  %v1844_v41 = vpop.f32.mrb[20].mxu1 }
 0x484   :  { %v828_v42 = vadd.f32 %v1844_v41, %v2595_v26  ;;  %v819_v43 = vpop.f32.mrb[21].mxu1 }
 0x485   :  { %v820_v44 = vadd.f32 %v2595_v26, %v819_v43  ;;  %v1845_v45 = vpop.f32.mrb[22].mxu1  ;;  %1870 = vmatprep.mubr.bf16.mxu0 %v898_v40 }
 0x486   :  { %v872_v46 = vmax.f32 %v828_v42, 0.0  ;;  %v831_v54 = vadd.f32 %v1845_v45, %v2595_v26  ;;  %v822_v55 = vpop.f32.mrb[23].mxu1  ;;  %1871 = vmatmul.mubr.bf16.vlgmr.msra.gmra.mrb[32].mxu0 %v899_v39 }
 0x487   :  { %v870_v57 = vmax.f32 %v820_v44, 0.0  ;;  %v823_v58 = vadd.f32 %v2595_v26, %v822_v55  ;;  %1919 = vmatpush3.bf16.msra.mxu0 %v2038_v28 }
 0x488   :  { %888 = vst [vmem:[#allocation19 + $0x30] sm:$0xff] %v872_v46  ;;  %v873_v59 = vmax.f32 %v831_v54, 0.0  ;;  %1920 = vmatprep.subr.bf16.mxu0 %v2039_v29 }
 0x489   :  { %886 = vst [vmem:[#allocation19 + $0x20] sm:$0xff] %v870_v57  ;;  %v871_v60 = vmax.f32 %v823_v58, 0.0 }
 0x48a   :  { %889 = vst [vmem:[#allocation19 + $0x38] sm:$0xff] %v873_v59  ;;  %v901_v61 = vpack.c.bf16 %v873_v59, %v872_v46 }
 0x48b   :  { %887 = vst [vmem:[#allocation19 + $0x28] sm:$0xff] %v871_v60  ;;  %v900_v56 = vpack.c.bf16 %v871_v60, %v870_v57  ;;  %v1848_v62 = vpop.f32.mrb[24].mxu1  ;;  %1921 = vmatpush3.bf16.msra.mxu0 %v2039_v29 }
 0x48c   :  { %v844_v63 = vadd.f32 %v1848_v62, %v2595_v26  ;;  %v835_v0 = vpop.f32.mrb[25].mxu1  ;;  %1922 = vmatprep.subr.bf16.mxu0 %v2040_v30 }
 0x48d   :  { %v836_v1 = vadd.f32 %v2595_v26, %v835_v0  ;;  %v1849_v2 = vpop.f32.mrb[26].mxu1  ;;  %1874 = vmatprep.mubr.bf16.mxu0 %v900_v56  ;;  %v2044_v0 = vld [vmem:[#allocation16 + $0x30] sm:$0xff]  }
 0x48e   :  { %v876_v3 = vmax.f32 %v844_v63, 0.0  ;;  %v847_v4 = vadd.f32 %v1849_v2, %v2595_v26  ;;  %v838_v5 = vpop.f32.mrb[27].mxu1  ;;  %1875 = vmatmul.mubr.bf16.gmra.mrb[36].mxu0 %v901_v61  ;;  %v1588_v2 = vld [vmem:[#allocation14] ss:$0 sm:$0xff] }
 0x48f   :  { %v874_v6 = vmax.f32 %v836_v1, 0.0  ;;  %v839_v7 = vadd.f32 %v2595_v26, %v838_v5  ;;  %1923 = vmatpush3.bf16.msra.mxu0 %v2040_v30  ;;  %v2045_v1 = vld [vmem:[#allocation16 + $0x38] sm:$0xff]  }
 0x490   :  { %892 = vst [vmem:[#allocation19 + $0x50] sm:$0xff] %v876_v3  ;;  %v877_v8 = vmax.f32 %v847_v4, 0.0  ;;  %1924 = vmatprep.subr.bf16.mxu0 %v2041_v31 }
 0x491   :  { %890 = vst [vmem:[#allocation19 + $0x40] sm:$0xff] %v874_v6  ;;  %v875_v9 = vmax.f32 %v839_v7, 0.0 }
 0x492   :  { %893 = vst [vmem:[#allocation19 + $0x58] sm:$0xff] %v877_v8  ;;  %v903_v10 = vpack.c.bf16 %v877_v8, %v876_v3 }
 0x493   :  { %891 = vst [vmem:[#allocation19 + $0x48] sm:$0xff] %v875_v9  ;;  %v902_v11 = vpack.c.bf16 %v875_v9, %v874_v6  ;;  %v1852_v12 = vpop.f32.mrb[28].mxu1  ;;  %1925 = vmatpush3.bf16.msra.mxu0 %v2041_v31 }
 0x494   :  { %v860_v13 = vadd.f32 %v1852_v12, %v2595_v26  ;;  %v851_v14 = vpop.f32.mrb[29].mxu1 }
 0x495   :  { %v852_v15 = vadd.f32 %v2595_v26, %v851_v14  ;;  %v1853_v17 = vpop.f32.mrb[30].mxu1  ;;  %1878 = vmatprep.mubr.bf16.mxu0 %v902_v11 }
 0x496   :  { %v880_v18 = vmax.f32 %v860_v13, 0.0  ;;  %v863_v19 = vadd.f32 %v1853_v17, %v2595_v26  ;;  %v854_v20 = vpop.f32.mrb[31].mxu1  ;;  %1879 = vmatmul.mubr.bf16.gmra.mrb[40].mxu0 %v903_v10 }
 0x497   :  { %v878_v21 = vmax.f32 %v852_v15, 0.0  ;;  %v855_v22 = vadd.f32 %v2595_v26, %v854_v20  ;;  %v2042_v26 = vld [vmem:[#allocation16 + $0x20] sm:$0xff]  }
 0x498   :  { %896 = vst [vmem:[#allocation19 + $0x70] sm:$0xff] %v880_v18  ;;  %v881_v23 = vmax.f32 %v863_v19, 0.0  ;;  %1926 = vmatprep.subr.bf16.mxu0 %v2042_v26 }
 0x499   :  { %894 = vst [vmem:[#allocation19 + $0x60] sm:$0xff] %v878_v21  ;;  %v879_v24 = vmax.f32 %v855_v22, 0.0  ;;  %1927 = vmatpush3.bf16.msra.mxu0 %v2042_v26 }
 0x49a   :  { %897 = vst [vmem:[#allocation19 + $0x78] sm:$0xff] %v881_v23  ;;  %v905_v25 = vpack.c.bf16 %v881_v23, %v880_v18  ;;  %1928 = vmatprep.subr.bf16.mxu0 %v2043_v32 }
 0x49b   :  { %895 = vst [vmem:[#allocation19 + $0x68] sm:$0xff] %v879_v24  ;;  %v904_v27 = vpack.c.bf16 %v879_v24, %v878_v21 }
 0x49d   :  { %1882 = vmatprep.mubr.bf16.mxu0 %v904_v27  ;;  %1929 = vmatpush3.bf16.msra.mxu0 %v2043_v32 }
 0x49e   :  { %1883 = vmatmul.mubr.bf16.gmra.mrb[44].mxu0 %v905_v25  ;;  %1930 = vmatprep.subr.bf16.mxu0 %v2044_v0 }
 0x4a1   :  { %1931 = vmatpush3.bf16.msra.mxu0 %v2044_v0 }
 0x4a2   :  { %1932 = vmatprep.subr.bf16.mxu0 %v2045_v1 }
 0x4a5   :  { %1933 = vmatpush3.bf16.msra.mxu0 %v2045_v1 }
 0x559   :  { %v1872_v33 = vpop.f32.mrb[32].mxu0 }
 0x55a   :  { %v1004_v34 = vpop.f32.mrb[33].mxu0 }
 0x55b   :  { %v1873_v35 = vpop.f32.mrb[34].mxu0 }
 0x55c   :  { %v1068_v36 = vpack.c.bf16 %v1873_v35, %v1872_v33  ;;  %v1007_v37 = vpop.f32.mrb[35].mxu0 }
 0x55d   :  { %v1067_v38 = vpack.c.bf16 %v1007_v37, %v1004_v34 }
 0x55f   :  { %1886 = vmatprep.subr.bf16.mxu1 %v1067_v38 }
 0x560   :  { %1887 = vmatpush3.bf16.msra.mxu1 %v1067_v38 }
 0x561   :  { %v1876_v39 = vpop.f32.mrb[36].mxu0  ;;  %1888 = vmatprep.subr.bf16.mxu1 %v1068_v36 }
 0x562   :  { %v1020_v40 = vpop.f32.mrb[37].mxu0 }
 0x563   :  { %v1877_v41 = vpop.f32.mrb[38].mxu0 }
 0x564   :  { %v1070_v42 = vpack.c.bf16 %v1877_v41, %v1876_v39  ;;  %v1023_v43 = vpop.f32.mrb[39].mxu0  ;;  %1889 = vmatpush3.bf16.msra.mxu1 %v1068_v36 }
 0x565   :  { %v1069_v44 = vpack.c.bf16 %v1023_v43, %v1020_v40 }
 0x567   :  { %1890 = vmatprep.subr.bf16.mxu1 %v1069_v44 }
 0x568   :  { %1891 = vmatpush3.bf16.msra.mxu1 %v1069_v44 }
 0x569   :  { %v1880_v45 = vpop.f32.mrb[40].mxu0  ;;  %1892 = vmatprep.subr.bf16.mxu1 %v1070_v42 }
 0x56a   :  { %v1036_v46 = vpop.f32.mrb[41].mxu0 }
 0x56b   :  { %v1881_v54 = vpop.f32.mrb[42].mxu0 }
 0x56c   :  { %v1072_v55 = vpack.c.bf16 %v1881_v54, %v1880_v45  ;;  %v1039_v57 = vpop.f32.mrb[43].mxu0  ;;  %1893 = vmatpush3.bf16.msra.mxu1 %v1070_v42 }
 0x56d   :  { %v1071_v58 = vpack.c.bf16 %v1039_v57, %v1036_v46 }
 0x56f   :  { %1894 = vmatprep.subr.bf16.mxu1 %v1071_v58 }
 0x570   :  { %1895 = vmatpush3.bf16.msra.mxu1 %v1071_v58 }
 0x571   :  { %v1884_v59 = vpop.f32.mrb[44].mxu0  ;;  %1896 = vmatprep.subr.bf16.mxu1 %v1072_v55 }
 0x572   :  { %v1052_v60 = vpop.f32.mrb[45].mxu0 }
 0x573   :  { %v1885_v61 = vpop.f32.mrb[46].mxu0 }
 0x574   :  { %v1074_v56 = vpack.c.bf16 %v1885_v61, %v1884_v59  ;;  %v1055_v62 = vpop.f32.mrb[47].mxu0  ;;  %1897 = vmatpush3.bf16.msra.mxu1 %v1072_v55 }
 0x575   :  { %v1073_v63 = vpack.c.bf16 %v1055_v62, %v1052_v60 }
 0x577   :  { %1898 = vmatprep.subr.bf16.mxu1 %v1073_v63 }
 0x578   :  { %1899 = vmatpush3.bf16.msra.mxu1 %v1073_v63 }
 0x579   :  { %1900 = vmatprep.subr.bf16.mxu1 %v1074_v56 }
 0x57c   :  { %1901 = vmatpush3.bf16.msra.mxu1 %v1074_v56 }
 0x57f   :  { %1903 = vmatmul.mubr.bf16.vlgmr.msra.gmra.mrb[32].mxu1 %v2565_v47 }
 0x580   :  { %1906 = vmatprep.mubr.bf16.mxu1 %v2567_v48 }
 0x587   :  { %1907 = vmatmul.mubr.bf16.gmra.mrb[36].mxu1 %v2571_v49 }
 0x588   :  { %1910 = vmatprep.mubr.bf16.mxu1 %v2573_v50 }
 0x58f   :  { %1911 = vmatmul.mubr.bf16.gmra.mrb[40].mxu1 %v2577_v51 }
 0x590   :  { %1914 = vmatprep.mubr.bf16.mxu1 %v2579_v52 }
 0x597   :  { %1915 = vmatmul.mubr.bf16.gmra.mrb[44].mxu1 %v2583_v53 }
 0x598   :  { %1966 = vmatprep.mubr.bf16.mxu1 %v2562_v16 }
 0x652   :  { %v1904_v3 = vpop.f32.mrb[32].mxu1 }
 0x653   :  { %v1125_v4 = vadd.f32 %v1904_v3, %v1588_v2  ;;  %v1116_v5 = vpop.f32.mrb[33].mxu1 }
 0x654   :  { %v1117_v6 = vadd.f32 %v1588_v2, %v1116_v5  ;;  %v1905_v7 = vpop.f32.mrb[34].mxu1 }
 0x655   :  { %v1128_v8 = vadd.f32 %v1905_v7, %v1588_v2  ;;  %v1119_v9 = vpop.f32.mrb[35].mxu1  ;;  %v1181_v11 = vmax.f32 %v1125_v4, 0.0 }
 0x656   :  { %v1120_v10 = vadd.f32 %v1588_v2, %v1119_v9  ;;  %v1179_v13 = vmax.f32 %v1117_v6, 0.0 }
 0x657   :  { %v1182_v12 = vmax.f32 %v1128_v8, 0.0 }
 0x658   :  { %v1180_v14 = vmax.f32 %v1120_v10, 0.0 }
 0x659   :  { %v1196_v16 = vpack.c.bf16 %v1182_v12, %v1181_v11 }
 0x65a   :  { %v1195_v15 = vpack.c.bf16 %v1180_v14, %v1179_v13  ;;  %v1908_v17 = vpop.f32.mrb[36].mxu1 }
 0x65b   :  { %v1141_v18 = vadd.f32 %v1908_v17, %v1588_v2  ;;  %v1132_v19 = vpop.f32.mrb[37].mxu1 }
 0x65c   :  { %v1133_v20 = vadd.f32 %v1588_v2, %v1132_v19  ;;  %v1909_v21 = vpop.f32.mrb[38].mxu1  ;;  %1934 = vmatprep.mubr.bf16.mxu0 %v1195_v15 }
 0x65d   :  { %v1144_v22 = vadd.f32 %v1909_v21, %v1588_v2  ;;  %v1135_v23 = vpop.f32.mrb[39].mxu1  ;;  %1935 = vmatmul.mubr.bf16.vlgmr.msra.gmra.mrb[48].mxu0 %v1196_v16  ;;  %v1185_v25 = vmax.f32 %v1141_v18, 0.0 }
 0x65e   :  { %v1136_v24 = vadd.f32 %v1588_v2, %v1135_v23  ;;  %v1183_v28 = vmax.f32 %v1133_v20, 0.0 }
 0x65f   :  { %v1186_v27 = vmax.f32 %v1144_v22, 0.0 }
 0x660   :  { %v1184_v29 = vmax.f32 %v1136_v24, 0.0 }
 0x661   :  { %v1198_v30 = vpack.c.bf16 %v1186_v27, %v1185_v25 }
 0x662   :  { %v1197_v31 = vpack.c.bf16 %v1184_v29, %v1183_v28  ;;  %v1912_v26 = vpop.f32.mrb[40].mxu1 }
 0x663   :  { %v1157_v32 = vadd.f32 %v1912_v26, %v1588_v2  ;;  %v1148_v33 = vpop.f32.mrb[41].mxu1 }
 0x664   :  { %v1149_v34 = vadd.f32 %v1588_v2, %v1148_v33  ;;  %v1913_v35 = vpop.f32.mrb[42].mxu1  ;;  %1938 = vmatprep.mubr.bf16.mxu0 %v1197_v31 }
 0x665   :  { %v1160_v36 = vadd.f32 %v1913_v35, %v1588_v2  ;;  %v1151_v37 = vpop.f32.mrb[43].mxu1  ;;  %1939 = vmatmul.mubr.bf16.gmra.mrb[52].mxu0 %v1198_v30  ;;  %v1189_v39 = vmax.f32 %v1157_v32, 0.0 }
 0x666   :  { %v1152_v38 = vadd.f32 %v1588_v2, %v1151_v37  ;;  %v1187_v41 = vmax.f32 %v1149_v34, 0.0 }
 0x667   :  { %v1190_v40 = vmax.f32 %v1160_v36, 0.0 }
 0x668   :  { %v1188_v42 = vmax.f32 %v1152_v38, 0.0 }
 0x669   :  { %v1200_v43 = vpack.c.bf16 %v1190_v40, %v1189_v39 }
 0x66a   :  { %v1199_v44 = vpack.c.bf16 %v1188_v42, %v1187_v41  ;;  %v1916_v45 = vpop.f32.mrb[44].mxu1 }
 0x66b   :  { %v1173_v46 = vadd.f32 %v1916_v45, %v1588_v2  ;;  %v1164_v54 = vpop.f32.mrb[45].mxu1 }
 0x66c   :  { %v1165_v55 = vadd.f32 %v1588_v2, %v1164_v54  ;;  %v1917_v57 = vpop.f32.mrb[46].mxu1  ;;  %1942 = vmatprep.mubr.bf16.mxu0 %v1199_v44 }
 0x66d   :  { %v1176_v58 = vadd.f32 %v1917_v57, %v1588_v2  ;;  %v1167_v59 = vpop.f32.mrb[47].mxu1  ;;  %1943 = vmatmul.mubr.bf16.gmra.mrb[56].mxu0 %v1200_v43  ;;  %v1193_v61 = vmax.f32 %v1173_v46, 0.0 }
 0x66e   :  { %v1168_v60 = vadd.f32 %v1588_v2, %v1167_v59  ;;  %v1191_v62 = vmax.f32 %v1165_v55, 0.0 }
 0x66f   :  { %v1194_v56 = vmax.f32 %v1176_v58, 0.0 }
 0x670   :  { %v1192_v63 = vmax.f32 %v1168_v60, 0.0 }
 0x671   :  { %v1202_v0 = vpack.c.bf16 %v1194_v56, %v1193_v61 }
 0x672   :  { %v1201_v1 = vpack.c.bf16 %v1192_v63, %v1191_v62 }
 0x674   :  { %1946 = vmatprep.mubr.bf16.mxu0 %v1201_v1 }
 0x675   :  { %1947 = vmatmul.mubr.bf16.gmra.mrb[60].mxu0 %v1202_v0 }
 0x730   :  { %v1936_v3 = vpop.f32.mrb[48].mxu0 }
 0x731   :  { %v1301_v4 = vpop.f32.mrb[49].mxu0 }
 0x732   :  { %v1937_v5 = vpop.f32.mrb[50].mxu0 }
 0x733   :  { %v1365_v6 = vpack.c.bf16 %v1937_v5, %v1936_v3  ;;  %v1304_v7 = vpop.f32.mrb[51].mxu0 }
 0x734   :  { %v1364_v8 = vpack.c.bf16 %v1304_v7, %v1301_v4 }
 0x736   :  { %1950 = vmatprep.subr.bf16.mxu1 %v1364_v8 }
 0x737   :  { %1951 = vmatpush3.bf16.msra.mxu1 %v1364_v8 }
 0x738   :  { %v1940_v9 = vpop.f32.mrb[52].mxu0  ;;  %1952 = vmatprep.subr.bf16.mxu1 %v1365_v6 }
 0x739   :  { %v1317_v10 = vpop.f32.mrb[53].mxu0 }
 0x73a   :  { %v1941_v2 = vpop.f32.mrb[54].mxu0 }
 0x73b   :  { %v1367_v11 = vpack.c.bf16 %v1941_v2, %v1940_v9  ;;  %v1320_v12 = vpop.f32.mrb[55].mxu0  ;;  %1953 = vmatpush3.bf16.msra.mxu1 %v1365_v6 }
 0x73c   :  { %v1366_v13 = vpack.c.bf16 %v1320_v12, %v1317_v10 }
 0x73e   :  { %1954 = vmatprep.subr.bf16.mxu1 %v1366_v13 }
 0x73f   :  { %1955 = vmatpush3.bf16.msra.mxu1 %v1366_v13 }
 0x740   :  { %v1944_v14 = vpop.f32.mrb[56].mxu0  ;;  %1956 = vmatprep.subr.bf16.mxu1 %v1367_v11 }
 0x741   :  { %v1333_v16 = vpop.f32.mrb[57].mxu0 }
 0x742   :  { %v1945_v15 = vpop.f32.mrb[58].mxu0 }
 0x743   :  { %v1369_v17 = vpack.c.bf16 %v1945_v15, %v1944_v14  ;;  %v1336_v18 = vpop.f32.mrb[59].mxu0  ;;  %1957 = vmatpush3.bf16.msra.mxu1 %v1367_v11 }
 0x744   :  { %v1368_v19 = vpack.c.bf16 %v1336_v18, %v1333_v16 }
 0x746   :  { %1958 = vmatprep.subr.bf16.mxu1 %v1368_v19 }
 0x747   :  { %1959 = vmatpush3.bf16.msra.mxu1 %v1368_v19 }
 0x748   :  { %v1948_v20 = vpop.f32.mrb[60].mxu0  ;;  %1960 = vmatprep.subr.bf16.mxu1 %v1369_v17 }
 0x749   :  { %v1349_v21 = vpop.f32.mrb[61].mxu0 }
 0x74a   :  { %v1949_v22 = vpop.f32.mrb[62].mxu0 }
 0x74b   :  { %v1371_v23 = vpack.c.bf16 %v1949_v22, %v1948_v20  ;;  %v1352_v24 = vpop.f32.mrb[63].mxu0  ;;  %1961 = vmatpush3.bf16.msra.mxu1 %v1369_v17 }
 0x74c   :  { %v1370_v25 = vpack.c.bf16 %v1352_v24, %v1349_v21 }
 0x74e   :  { %1962 = vmatprep.subr.bf16.mxu1 %v1370_v25 }
 0x74f   :  { %1963 = vmatpush3.bf16.msra.mxu1 %v1370_v25 }
 0x750   :  { %1964 = vmatprep.subr.bf16.mxu1 %v1371_v23 }
 0x753   :  { %1965 = vmatpush3.bf16.msra.mxu1 %v1371_v23 }
 0x756   :  { %1967 = vmatmul.mubr.bf16.vlgmr.msra.gmra.mrb[48].mxu1 %v2565_v47 }
 0x757   :  { %1970 = vmatprep.mubr.bf16.mxu1 %v2567_v48 }
 0x75e   :  { %1971 = vmatmul.mubr.bf16.gmra.mrb[52].mxu1 %v2571_v49 }
 0x75f   :  { %1974 = vmatprep.mubr.bf16.mxu1 %v2573_v50 }
 0x766   :  { %1975 = vmatmul.mubr.bf16.gmra.mrb[56].mxu1 %v2577_v51 }
 0x767   :  { %1978 = vmatprep.mubr.bf16.mxu1 %v2579_v52 }
 0x76e   :  { %1979 = vmatmul.mubr.bf16.gmra.mrb[60].mxu1 %v2583_v53 }
 0x76f   :  { %2277 = shalt.err (!%p2274_p0)
}
 0x770   :  { %s2278_s3 = scalar_lea.hbm %s2668_s10, 2048 }
 0x771   :  { %p2279_p1 = scmp.ne.s32.totalorder %s2668_s10, %s2278_s3  ;;  %p2282_p2 = scmp.lt.u32.totalorder %s2278_s3, %s2668_s10 }
 0x773   :  { %p2284_p3 = pnand %p2282_p2, %p2279_p1 }
 0x775   :  { %2287 = shalt.err (!%p2284_p3)
}
 0x776   :  { %s2339_s18 = smov 128   ;;  %s2340_s7 = smov 8   ;;  %v1597_v47 = vld [vmem:[#allocation17] ss:$0 sm:$0xff] }
 0x777   :  { %1519 = dma.vmem_to_hbm [thread:$0]  %s1514_s30, 2048, %s2668_s10, [#allocation4], %s2339_s18, %s2339_s18, %s2340_s7  }
 0x778   :  { %s2341_s10 = smov [#allocation20]  }
 0x779   :  { %s1525_s2 = sshll.u32 %s2341_s10, 4  ;;  %s1526_s2 = int_to_ptr.vmem [resolvable:$true] %s1525_s2 }
 0x77a   :  { %s2288_s6 = scalar_lea.vmem %s1526_s2, 2048  ;;  %p2293_p5 = scmp.lt.s32.totalorder %s1526_s2, %s1526_s2 }
 0x77b   :  { %p2289_p4 = scmp.ne.s32.totalorder %s1526_s2, %s2288_s6  ;;  %p2294_p6 = scmp.lt.s32.totalorder %s2288_s6, %s2288_s6 }
 0x77d   :  { %p2295_p7 = por %p2294_p6, %p2293_p5 }
 0x77f   :  { %p2296_p8 = pnand %p2295_p7, %p2289_p4 }
 0x829   :  { %v1968_v48 = vpop.f32.mrb[48].mxu1 }
 0x82a   :  { %v1422_v49 = vadd.f32 %v1968_v48, %v1597_v47  ;;  %v1413_v50 = vpop.f32.mrb[49].mxu1 }
 0x82b   :  { %v1414_v51 = vadd.f32 %v1597_v47, %v1413_v50  ;;  %v1969_v52 = vpop.f32.mrb[50].mxu1 }
 0x82c   :  { %v1478_v53 = vmax.f32 %v1422_v49, 0.0  ;;  %v1425_v27 = vadd.f32 %v1969_v52, %v1597_v47  ;;  %v1416_v28 = vpop.f32.mrb[51].mxu1 }
 0x82d   :  { %v1476_v29 = vmax.f32 %v1414_v51, 0.0  ;;  %v1417_v30 = vadd.f32 %v1597_v47, %v1416_v28 }
 0x82e   :  { %1494 = vst [vmem:[#allocation20 + $0x10] sm:$0xff] %v1478_v53  ;;  %v1479_v31 = vmax.f32 %v1425_v27, 0.0 }
 0x82f   :  { %1492 = vst [vmem:[#allocation20] sm:$0xff] %v1476_v29  ;;  %v1477_v26 = vmax.f32 %v1417_v30, 0.0 }
 0x830   :  { %1495 = vst [vmem:[#allocation20 + $0x18] sm:$0xff] %v1479_v31 }
 0x831   :  { %1493 = vst [vmem:[#allocation20 + $0x8] sm:$0xff] %v1477_v26  ;;  %v1972_v32 = vpop.f32.mrb[52].mxu1 }
 0x832   :  { %v1438_v33 = vadd.f32 %v1972_v32, %v1597_v47  ;;  %v1429_v34 = vpop.f32.mrb[53].mxu1 }
 0x833   :  { %v1430_v35 = vadd.f32 %v1597_v47, %v1429_v34  ;;  %v1973_v36 = vpop.f32.mrb[54].mxu1 }
 0x834   :  { %v1482_v37 = vmax.f32 %v1438_v33, 0.0  ;;  %v1441_v38 = vadd.f32 %v1973_v36, %v1597_v47  ;;  %v1432_v39 = vpop.f32.mrb[55].mxu1 }
 0x835   :  { %v1480_v40 = vmax.f32 %v1430_v35, 0.0  ;;  %v1433_v41 = vadd.f32 %v1597_v47, %v1432_v39 }
 0x836   :  { %1498 = vst [vmem:[#allocation20 + $0x30] sm:$0xff] %v1482_v37  ;;  %v1483_v42 = vmax.f32 %v1441_v38, 0.0 }
 0x837   :  { %1496 = vst [vmem:[#allocation20 + $0x20] sm:$0xff] %v1480_v40  ;;  %v1481_v43 = vmax.f32 %v1433_v41, 0.0 }
 0x838   :  { %1499 = vst [vmem:[#allocation20 + $0x38] sm:$0xff] %v1483_v42 }
 0x839   :  { %1497 = vst [vmem:[#allocation20 + $0x28] sm:$0xff] %v1481_v43  ;;  %v1976_v44 = vpop.f32.mrb[56].mxu1 }
 0x83a   :  { %v1454_v45 = vadd.f32 %v1976_v44, %v1597_v47  ;;  %v1445_v46 = vpop.f32.mrb[57].mxu1 }
 0x83b   :  { %v1446_v54 = vadd.f32 %v1597_v47, %v1445_v46  ;;  %v1977_v55 = vpop.f32.mrb[58].mxu1 }
 0x83c   :  { %v1486_v57 = vmax.f32 %v1454_v45, 0.0  ;;  %v1457_v58 = vadd.f32 %v1977_v55, %v1597_v47  ;;  %v1448_v59 = vpop.f32.mrb[59].mxu1 }
 0x83d   :  { %v1484_v60 = vmax.f32 %v1446_v54, 0.0  ;;  %v1449_v61 = vadd.f32 %v1597_v47, %v1448_v59 }
 0x83e   :  { %1502 = vst [vmem:[#allocation20 + $0x50] sm:$0xff] %v1486_v57  ;;  %v1487_v56 = vmax.f32 %v1457_v58, 0.0 }
 0x83f   :  { %1500 = vst [vmem:[#allocation20 + $0x40] sm:$0xff] %v1484_v60  ;;  %v1485_v62 = vmax.f32 %v1449_v61, 0.0 }
 0x840   :  { %1503 = vst [vmem:[#allocation20 + $0x58] sm:$0xff] %v1487_v56 }
 0x841   :  { %1501 = vst [vmem:[#allocation20 + $0x48] sm:$0xff] %v1485_v62  ;;  %v1980_v63 = vpop.f32.mrb[60].mxu1 }
 0x842   :  { %v1470_v0 = vadd.f32 %v1980_v63, %v1597_v47  ;;  %v1461_v1 = vpop.f32.mrb[61].mxu1 }
 0x843   :  { %v1462_v3 = vadd.f32 %v1597_v47, %v1461_v1  ;;  %v1981_v4 = vpop.f32.mrb[62].mxu1 }
 0x844   :  { %v1490_v5 = vmax.f32 %v1470_v0, 0.0  ;;  %v1473_v6 = vadd.f32 %v1981_v4, %v1597_v47  ;;  %v1464_v7 = vpop.f32.mrb[63].mxu1 }
 0x845   :  { %v1488_v8 = vmax.f32 %v1462_v3, 0.0  ;;  %v1465_v9 = vadd.f32 %v1597_v47, %v1464_v7 }
 0x846   :  { %1506 = vst [vmem:[#allocation20 + $0x70] sm:$0xff] %v1490_v5  ;;  %v1491_v10 = vmax.f32 %v1473_v6, 0.0 }
 0x847   :  { %1504 = vst [vmem:[#allocation20 + $0x60] sm:$0xff] %v1488_v8  ;;  %v1489_v2 = vmax.f32 %v1465_v9, 0.0 }
 0x848   :  { %1507 = vst [vmem:[#allocation20 + $0x78] sm:$0xff] %v1491_v10 }
 0x849   :  { %1505 = vst [vmem:[#allocation20 + $0x68] sm:$0xff] %v1489_v2 }
 0x84a   :  { %2299 = shalt.err (!%p2296_p8)
}
 0x84b   :  { %s2300_s25 = scalar_lea.hbm %s2669_s11, 2048 }
 0x84c   :  { %p2301_p9 = scmp.ne.s32.totalorder %s2669_s11, %s2300_s25  ;;  %p2304_p10 = scmp.lt.u32.totalorder %s2300_s25, %s2669_s11 }
 0x84e   :  { %p2306_p11 = pnand %p2304_p10, %p2301_p9 }
 0x850   :  { %2309 = shalt.err (!%p2306_p11)
}
 0x851   :  { %1531 = dma.vmem_to_hbm [thread:$0]  %s1526_s2, 2048, %s2669_s11, [#allocation21], %s2339_s18, %s2339_s18, %s2340_s7  }
 0x852   :  { %2322 = dma.done.wait [#allocation4], 2048  }
 0x853   :  { %2323 = vsyncadd [#allocation4], 4294965248 }
 0x854   :  { %2324 = dma.done.wait [#allocation21], 2048  }
 0x855   :  { %2325 = vsyncadd [#allocation21], 4294965248 }
 0x856   :  { %1538 = vsyncpa [#allocation3], 1 }
 0x857   :  { %1539 = vsyncpa [#allocation6], 1 }
 0x858   :  { %1540 = vsyncpa [#allocation9], 1 }
 0x859   :  { %1541 = vsyncpa [#allocation12], 1 }
 0x85a   :  { %1542 = vsyncpa [#allocation15], 1 }
 0x85b   :  { %1543 = vsyncpa [#allocation18], 1 }
 0x85c   :  { %1544 = vsyncpa [#allocation4], 1 }
 0x85d   :  { %1545 = vsyncpa [#allocation21], 1 }

</bundles_post_ra>
